<compile_context>
chip_gen: v5e
topology: v5e:2x2
jax: 0.10.0
libtpu: 0.0.40
codegen_flags: <defaults>
</compile_context>

<pallas_src>
import math
from functools import partial

import jax
import jax.numpy as jnp
from jax.experimental import pallas as pl
from jax.experimental.pallas import tpu as pltpu


# ----------------------------------------------------------------------------
# Single fused kernel:
#   x_all  : (3B, T*Cin)   stacked x_enc / x_q / x_k, flattened per sample
#   hol    : (B,  T*D)     pre-gathered (holiday_table @ Wh)[idx], flattened
#   w_eff  : (T*Cin, T*Cout)  folded band-DFT + complex weights + irfft
#   b_eff  : (1, T*Cout)      folded band bias (irfft of the scattered bias)
#   w_eff2 : (T*Cin, T*D)     w_eff folded with the season half of the fuse weight
#   b2     : (1, T*D)         folded fuse bias (season-bias @ Ws + fuse_b)
# Outputs:
#   season_all : (3B, T*Cout)  lane-dense season signal for all three streams
#   enc_out    : (B,  T*D)     lane-dense fused encoder input (residual included)
# ----------------------------------------------------------------------------
def _fused_kernel(x_ref, hol_ref, weff_ref, beff_ref, weff2_ref, b2_ref,
                  season_ref, enc_ref):
    x = x_ref[...]                                                  # (3B, T*Cin)
    season_ref[...] = (
        jnp.dot(x, weff_ref[...], preferred_element_type=jnp.float32)
        + beff_ref[...])
    nb = enc_ref.shape[0]
    xb = x[:nb]                                                     # x_enc rows (first B of the concat)
    enc_ref[...] = (
        xb + hol_ref[...] + b2_ref[...]
        + jnp.dot(xb, weff2_ref[...], preferred_element_type=jnp.float32))


def fused_pallas(x_all, hol, w_eff, b_eff, w_eff2, b2):
    n, _ = x_all.shape
    batch = hol.shape[0]
    t_cout = w_eff.shape[1]
    t_d = w_eff2.shape[1]

    def spec(shape):
        nd = len(shape)
        return pl.BlockSpec(shape, lambda *_: (0,) * nd)

    return pl.pallas_call(
        _fused_kernel,
        grid=(1,),
        out_shape=(jax.ShapeDtypeStruct((n, t_cout), jnp.float32),
                   jax.ShapeDtypeStruct((batch, t_d), jnp.float32)),
        in_specs=[spec(x_all.shape), spec(hol.shape), spec(w_eff.shape),
                  spec(b_eff.shape), spec(w_eff2.shape), spec(b2.shape)],
        out_specs=(spec((n, t_cout)), spec((batch, t_d))),
        compiler_params=pltpu.CompilerParams(
            dimension_semantics=("arbitrary",)),
    )(x_all, hol, w_eff, b_eff, w_eff2, b2)


# ----------------------------------------------------------------------------
# Model forward (defined subcomponents, embed_type == 0 path)
# ----------------------------------------------------------------------------
@jax.jit
def model_forward(params, x_enc, x_q, x_k, x_mark_enc):
    B, T, D = x_enc.shape

    # TODO(synk): Bottom_encoder (`self.net`) not provided -> identity
    #             (requires enc_in == d_model).
    # Concat order (x_enc first) is relied upon inside the kernel for the
    # residual / fuse path.
    x_all = jnp.concatenate([x_enc, x_q, x_k], axis=0).reshape(3 * B, T * D)

    # Holiday indices (clamped to the table range; torch nn.Embedding would
    # raise on out-of-range indices).  Vectorized gather of the pre-folded
    # (table @ Wh) rows in the jitted wrapper.
    V = params["hol_wh"].shape[0]
    idx = jnp.clip(x_mark_enc[:, :, -1].astype(jnp.int32), 0, V - 1)   # (B, T)
    hol = params["hol_wh"][idx].reshape(B, T * D)                      # (B, T*D)

    season_flat, enc_flat = fused_pallas(
        x_all, hol, params["w_eff"], params["b_eff"],
        params["w_eff2"], params["b2"])

    season_all = season_flat.reshape(3 * B, T, D)
    season_x = season_all[:B]
    season_q = season_all[B:2 * B]
    season_k = season_all[2 * B:]
    enc_out = enc_flat.reshape(B, T, D)

    # TODO(synk): Contrasive_loss not provided; report 0
    #             (season_q / season_k are still computed).
    contrastive_loss = jnp.float32(0.0)

    # TODO(synk): Encoder_LSTM / Decoder_LSTM / projection decode loop omitted
    #             (class definitions not provided in the source).
    return enc_out, season_x, season_q, season_k, contrastive_loss


# ----------------------------------------------------------------------------
# Deterministic parameter construction (synthetic, matching __init__ shapes)
# with the pre-folds described above.
# ----------------------------------------------------------------------------
def make_params(key, d_model, seq_len, band_num):
    total = seq_len // 2 + 1
    band = 0                                       # only sfd[0] is used downstream
    num_freqs = total // band_num + (total % band_num if band == band_num - 1 else 0)
    start = band * (total // band_num)
    end = start + num_freqs

    k = jax.random.split(key, 8)
    bound_w = 1.0 / math.sqrt(d_model)
    wr = jax.random.uniform(k[0], (num_freqs, d_model, d_model), jnp.float32, -bound_w, bound_w)
    wi = jax.random.uniform(k[1], (num_freqs, d_model, d_model), jnp.float32, -bound_w, bound_w)
    br = jax.random.uniform(k[2], (num_freqs, d_model), jnp.float32, -bound_w, bound_w)
    bi = jax.random.uniform(k[3], (num_freqs, d_model), jnp.float32, -bound_w, bound_w)

    holiday_table = jax.random.normal(k[4], (24, d_model), jnp.float32)

    bound_f = 1.0 / math.sqrt(2 * d_model)
    fuse_w = jax.random.uniform(k[5], (d_model, 2 * d_model), jnp.float32, -bound_f, bound_f)
    fuse_b = jax.random.uniform(k[6], (d_model,), jnp.float32, -bound_f, bound_f)
    fuse_wt = fuse_w.T                              # (2D, D); torch Linear: y = x @ W^T + b

    w_c = wr + 1j * wi                              # (F, D, D) complex band weights
    b_c = br + 1j * bi                              # (F, D)    complex band bias

    # --- Fold band-rfft + complex weights + irfft into W_eff (T*D, T*D) ------
    # Exact by R-linearity of the map x -> irfft(scatter(rfft(x)[band] @ W)):
    # push the identity basis through the reference map.
    TD = seq_len * d_model
    eye = jnp.eye(TD, dtype=jnp.float32).reshape(TD, seq_len, d_model)
    xf = jnp.fft.rfft(eye, axis=1)                                    # (TD, total, D)
    band_out = jnp.einsum("bti,tio->bto", xf[:, start:end], w_c)      # (TD, F, D)
    full = jnp.zeros((TD, total, d_model), jnp.complex64).at[:, start:end].set(band_out)
    w_eff = jnp.fft.irfft(full, n=seq_len, axis=1).astype(jnp.float32).reshape(TD, TD)

    full_b = jnp.zeros((total, d_model), jnp.complex64).at[start:end].set(b_c)
    b_eff2d = jnp.fft.irfft(full_b, n=seq_len, axis=0).astype(jnp.float32)   # (T, D)
    b_eff = b_eff2d.reshape(1, TD)

    # --- Fold the fuse Linear:  enc = x + hol @ Wh + season @ Ws + b ---------
    wh = fuse_wt[:d_model, :]                        # (D, D) holiday half
    ws = fuse_wt[d_model:, :]                        # (D, D) season half
    w_eff2 = jnp.einsum("kto,od->ktd",
                        w_eff.reshape(TD, seq_len, d_model), ws).reshape(TD, TD)
    b2 = (b_eff2d @ ws + fuse_b[None, :]).reshape(1, TD)
    hol_wh = holiday_table @ wh                      # (V, D)

    params = {
        "w_eff": w_eff, "b_eff": b_eff,
        "w_eff2": w_eff2, "b2": b2,
        "hol_wh": hol_wh,
    }
    ref_params = {
        "wr": wr, "wi": wi, "br": br, "bi": bi,
        "holiday_table": holiday_table,
        "fuse_wt": fuse_wt, "fuse_b": fuse_b,
        "start": start, "end": end,
    }
    return params, ref_params


if __name__ == "__main__":
    B, T, D = 2, 16, 32            # batch, seq_len, d_model (= enc_in)
    band_num = 1
    key = jax.random.PRNGKey(0)
    kx, kq, kk, km, kp = jax.random.split(key, 5)

    x_enc = jax.random.normal(kx, (B, T, D), jnp.float32)
    x_q = jax.random.normal(kq, (B, T, D), jnp.float32)
    x_k = jax.random.normal(kk, (B, T, D), jnp.float32)
    x_mark_enc = jax.random.randint(km, (B, T, 4), 0, 24, jnp.int32)

    params, ref = make_params(kp, D, T, band_num)

    outs = jax.block_until_ready(
        model_forward(params, x_enc, x_q, x_k, x_mark_enc))
    enc_out, season_x, season_q, season_k, _ = outs

    # --- numeric reference check (pure jnp / XLA) for the Pallas path --------
    start, end = ref["start"], ref["end"]
    w_c = ref["wr"] + 1j * ref["wi"]
    b_c = ref["br"] + 1j * ref["bi"]

    def ref_season(x):
        xf = jnp.fft.rfft(x, axis=1)
        band = jnp.einsum("bti,tio->bto", xf[:, start:end], w_c) + b_c
        full = jnp.zeros((x.shape[0], T // 2 + 1, D),
                         jnp.complex64).at[:, start:end].set(band)
        return jnp.fft.irfft(full, n=T, axis=1)

    r_sx, r_sq, r_sk = ref_season(x_enc), ref_season(x_q), ref_season(x_k)
    ref_idx = jnp.clip(x_mark_enc[:, :, -1], 0, 23)
    r_hol = ref["holiday_table"][ref_idx]
    r_cat = jnp.concatenate([r_hol, r_sx], axis=-1)
    r_enc = x_enc + r_cat @ ref["fuse_wt"] + ref["fuse_b"]

    assert jnp.allclose(season_x, r_sx, atol=1e-3, rtol=1e-3), \
        float(jnp.max(jnp.abs(season_x - r_sx)))
    assert jnp.allclose(season_q, r_sq, atol=1e-3, rtol=1e-3), \
        float(jnp.max(jnp.abs(season_q - r_sq)))
    assert jnp.allclose(season_k, r_sk, atol=1e-3, rtol=1e-3), \
        float(jnp.max(jnp.abs(season_k - r_sk)))
    assert jnp.allclose(enc_out, r_enc, atol=1e-3, rtol=1e-3), \
        float(jnp.max(jnp.abs(enc_out - r_enc)))

    print("KERNEL_OK")
</pallas_src>

<mosaic_0001>
module attributes {stable_mosaic.version = 11 : i64} {
  func.func @_fused_kernel(%arg0: i32, %arg1: memref<6x512xf32, #tpu.memory_space<vmem>>, %arg2: memref<2x512xf32, #tpu.memory_space<vmem>>, %arg3: memref<512x512xf32, #tpu.memory_space<vmem>>, %arg4: memref<1x512xf32, #tpu.memory_space<vmem>>, %arg5: memref<512x512xf32, #tpu.memory_space<vmem>>, %arg6: memref<1x512xf32, #tpu.memory_space<vmem>>, %arg7: memref<6x512xf32, #tpu.memory_space<vmem>>, %arg8: memref<2x512xf32, #tpu.memory_space<vmem>>) attributes {dimension_semantics = [#tpu.dimension_semantics<arbitrary>], iteration_bounds = array<i64: 1>, scalar_prefetch = 0 : i64, scratch_operands = 0 : i64, tpu.core_type = #tpu.core_type<tc>, window_params = [{pipeline_mode = #tpu.pipeline_mode<synchronous>, transform_indices = @transform_0, window_bounds = array<i64: 6, 512>}, {pipeline_mode = #tpu.pipeline_mode<synchronous>, transform_indices = @transform_1, window_bounds = array<i64: 2, 512>}, {pipeline_mode = #tpu.pipeline_mode<synchronous>, transform_indices = @transform_2, window_bounds = array<i64: 512, 512>}, {pipeline_mode = #tpu.pipeline_mode<synchronous>, transform_indices = @transform_3, window_bounds = array<i64: 1, 512>}, {pipeline_mode = #tpu.pipeline_mode<synchronous>, transform_indices = @transform_4, window_bounds = array<i64: 512, 512>}, {pipeline_mode = #tpu.pipeline_mode<synchronous>, transform_indices = @transform_5, window_bounds = array<i64: 1, 512>}, {pipeline_mode = #tpu.pipeline_mode<synchronous>, transform_indices = @transform_6, window_bounds = array<i64: 6, 512>}, {pipeline_mode = #tpu.pipeline_mode<synchronous>, transform_indices = @transform_7, window_bounds = array<i64: 2, 512>}]} {
    %c0 = arith.constant 0 : index
    %c0_0 = arith.constant 0 : index
    %0 = vector.load %arg1[%c0, %c0_0] : memref<6x512xf32, #tpu.memory_space<vmem>>, vector<6x512xf32>
    %c0_1 = arith.constant 0 : index
    %c0_2 = arith.constant 0 : index
    %1 = vector.load %arg3[%c0_1, %c0_2] : memref<512x512xf32, #tpu.memory_space<vmem>>, vector<512x512xf32>
    %cst = arith.constant dense<0.000000e+00> : vector<6x512xf32>
    %2 = tpu.matmul %0, %1, %cst {dimension_numbers = #tpu.dot_dimension_numbers<[1], [0], [0], [1], [0, 0, 1, 1], [], []>} : vector<6x512xf32>, vector<512x512xf32>, vector<6x512xf32> -> vector<6x512xf32>
    %c0_3 = arith.constant 0 : index
    %c0_4 = arith.constant 0 : index
    %3 = vector.load %arg4[%c0_3, %c0_4] : memref<1x512xf32, #tpu.memory_space<vmem>>, vector<1x512xf32>
    %4 = vector.broadcast %3 : vector<1x512xf32> to vector<6x512xf32>
    %5 = arith.addf %2, %4 : vector<6x512xf32>
    %c0_5 = arith.constant 0 : index
    %c0_6 = arith.constant 0 : index
    %6 = vector.load %arg7[%c0_5, %c0_6] : memref<6x512xf32, #tpu.memory_space<vmem>>, vector<6x512xf32>
    tpu.vector_store %arg7[%c0_5, %c0_6], %5 {strides = array<i32>} : memref<6x512xf32, #tpu.memory_space<vmem>>, vector<6x512xf32>,
    %7 = vector.extract_strided_slice %0 {offsets = [0, 0], sizes = [2, 512], strides = [1, 1]} : vector<6x512xf32> to vector<2x512xf32>
    %c0_7 = arith.constant 0 : index
    %c0_8 = arith.constant 0 : index
    %8 = vector.load %arg2[%c0_7, %c0_8] : memref<2x512xf32, #tpu.memory_space<vmem>>, vector<2x512xf32>
    %9 = arith.addf %7, %8 : vector<2x512xf32>
    %c0_9 = arith.constant 0 : index
    %c0_10 = arith.constant 0 : index
    %10 = vector.load %arg6[%c0_9, %c0_10] : memref<1x512xf32, #tpu.memory_space<vmem>>, vector<1x512xf32>
    %11 = vector.broadcast %10 : vector<1x512xf32> to vector<2x512xf32>
    %12 = arith.addf %9, %11 : vector<2x512xf32>
    %c0_11 = arith.constant 0 : index
    %c0_12 = arith.constant 0 : index
    %13 = vector.load %arg5[%c0_11, %c0_12] : memref<512x512xf32, #tpu.memory_space<vmem>>, vector<512x512xf32>
    %cst_13 = arith.constant dense<0.000000e+00> : vector<2x512xf32>
    %14 = tpu.matmul %7, %13, %cst_13 {dimension_numbers = #tpu.dot_dimension_numbers<[1], [0], [0], [1], [0, 0, 1, 1], [], []>} : vector<2x512xf32>, vector<512x512xf32>, vector<2x512xf32> -> vector<2x512xf32>
    %15 = arith.addf %12, %14 : vector<2x512xf32>
    %c0_14 = arith.constant 0 : index
    %c0_15 = arith.constant 0 : index
    %16 = vector.load %arg8[%c0_14, %c0_15] : memref<2x512xf32, #tpu.memory_space<vmem>>, vector<2x512xf32>
    tpu.vector_store %arg8[%c0_14, %c0_15], %15 {strides = array<i32>} : memref<2x512xf32, #tpu.memory_space<vmem>>, vector<2x512xf32>,
    return
  }
  func.func @transform_0(%arg0: i32) -> (i32, i32) {
    %c0_i32 = arith.constant 0 : i32
    %c0_i32_0 = arith.constant 0 : i32
    %c0_i32_1 = arith.constant 0 : i32
    return %c0_i32, %c0_i32_0 : i32, i32
  }
  func.func @transform_1(%arg0: i32) -> (i32, i32) {
    %c0_i32 = arith.constant 0 : i32
    %c0_i32_0 = arith.constant 0 : i32
    %c0_i32_1 = arith.constant 0 : i32
    return %c0_i32, %c0_i32_0 : i32, i32
  }
  func.func @transform_2(%arg0: i32) -> (i32, i32) {
    %c0_i32 = arith.constant 0 : i32
    %c0_i32_0 = arith.constant 0 : i32
    %c0_i32_1 = arith.constant 0 : i32
    return %c0_i32, %c0_i32_0 : i32, i32
  }
  func.func @transform_3(%arg0: i32) -> (i32, i32) {
    %c0_i32 = arith.constant 0 : i32
    %c0_i32_0 = arith.constant 0 : i32
    %c0_i32_1 = arith.constant 0 : i32
    return %c0_i32, %c0_i32_0 : i32, i32
  }
  func.func @transform_4(%arg0: i32) -> (i32, i32) {
    %c0_i32 = arith.constant 0 : i32
    %c0_i32_0 = arith.constant 0 : i32
    %c0_i32_1 = arith.constant 0 : i32
    return %c0_i32, %c0_i32_0 : i32, i32
  }
  func.func @transform_5(%arg0: i32) -> (i32, i32) {
    %c0_i32 = arith.constant 0 : i32
    %c0_i32_0 = arith.constant 0 : i32
    %c0_i32_1 = arith.constant 0 : i32
    return %c0_i32, %c0_i32_0 : i32, i32
  }
  func.func @transform_6(%arg0: i32) -> (i32, i32) {
    %c0_i32 = arith.constant 0 : i32
    %c0_i32_0 = arith.constant 0 : i32
    %c0_i32_1 = arith.constant 0 : i32
    return %c0_i32, %c0_i32_0 : i32, i32
  }
  func.func @transform_7(%arg0: i32) -> (i32, i32) {
    %c0_i32 = arith.constant 0 : i32
    %c0_i32_0 = arith.constant 0 : i32
    %c0_i32_1 = arith.constant 0 : i32
    return %c0_i32, %c0_i32_0 : i32, i32
  }
}

</mosaic_0001>

<bundles_post_ra>
// kernel: model_forward.1
= control target key start
LH: loop header
LB: loop body
LE: loop exit
PB: predicated region body
PF: predicated region fallthrough
CT: control target
= control target key end

     0   :  { %13 = vsyncpa [#allocation3], 0  ;;  %s1501_s0 = inlined_call_operand.vmem [shape: f32[6,512], index: 0, kind: input, shape index: {}]   ;;  %s1502_s1 = inlined_call_operand.vmem [shape: f32[2,512], index: 1, kind: input, shape index: {}]   ;;  %s1503_s2 = inlined_call_operand.hbm [shape: f32[512,512], index: 2, kind: input, shape index: {}]   ;;  %s1504_s3 = inlined_call_operand.vmem [shape: f32[1,512], index: 3, kind: input, shape index: {}]   ;;  %s1505_s4 = inlined_call_operand.hbm [shape: f32[512,512], index: 4, kind: input, shape index: {}]   ;;  %s1506_s5 = inlined_call_operand.vmem [shape: f32[1,512], index: 5, kind: input, shape index: {}]   ;;  %s1507_s6 = inlined_call_operand.vmem [shape: f32[6,512], index: 6, kind: output, shape index: {0}]   ;;  %s1508_s7 = inlined_call_operand.vmem [shape: f32[2,512], index: 7, kind: output, shape index: {1}]  }
   0x1   :  { %s23_s26 = sshll.u32 %s1503_s2, 4  ;;  %s24_s26 = int_to_ptr.hbm [resolvable:$true] %s23_s26 }
   0x2   :  { %14 = vsyncpa [#allocation5], 0  ;;  %s1345_s27 = smov [#allocation2]   ;;  %s38_s8 = sshll.u32 %s1505_s4, 4  ;;  %s39_s8 = int_to_ptr.hbm [resolvable:$true] %s38_s8 }
   0x3   :  { %s25_s28 = sshll.u32 %s1345_s27, 4  ;;  %s1346_s9 = smov 512   ;;  %s26_s28 = int_to_ptr.vmem [resolvable:$true] %s25_s28 }
   0x4   :  { %s1347_s10 = smov 32   ;;  %s1348_s11 = smov [#allocation4]  }
   0x5   :  { %31 = dma.hbm_to_vmem [thread:$0]  %s24_s26, 32768, %s26_s28, [#allocation3], %s1346_s9, %s1346_s9, %s1347_s10  }
   0x6   :  { %s40_s12 = sshll.u32 %s1348_s11, 4  ;;  %s41_s12 = int_to_ptr.vmem [resolvable:$true] %s40_s12 }
   0x7   :  { %46 = dma.hbm_to_vmem [thread:$0]  %s39_s8, 32768, %s41_s12, [#allocation5], %s1346_s9, %s1346_s9, %s1347_s10  }
   0x8   :  { %1341 = dma.done.wait [#allocation3], 32768  }
   0x9   :  { %1342 = vsyncadd [#allocation3], 4294934528 }
   0xa   :  { %1343 = dma.done.wait [#allocation5], 32768  }
   0xb   :  { %1344 = vsyncadd [#allocation5], 4294934528  ;;  %v249_v0 = vld [vmem:[#allocation2 + $0x5e0] sm:$0xff]  ;;  %v250_v62 = vld [vmem:[#allocation2 + $0x5e8] sm:$0xff]  ;;  %vm1267_vm0 = vcmask 1041408   ;;  %vm1269_vm1 = vcmask 1045508  }
   0xc   :  { %v245_v1 = vld [vmem:[#allocation2 + $0x5c0] sm:$0xff]  ;;  %367 = vmatpush.msra.mxu2 %v249_v0  ;;  %v314_v63 = vld [vmem:[#allocation2 + $0x7e8] sm:$0xff]  ;;  %vm1271_vm2 = vcmask 1043456  }
   0xd   :  { %v313_v2 = vld [vmem:[#allocation2 + $0x7e0] sm:$0xff] }
   0xe   :  { %387 = vmatpush.msra.mxu3 %v313_v2  ;;  %v121_v3 = vld [vmem:[#allocation2 + $0x1e0] sm:$0xff]  ;;  %368 = vmatpush.msra.mxu2 %v245_v1  ;;  %v246_v2 = vld [vmem:[#allocation2 + $0x5c8] sm:$0xff] }
   0xf   :  { %v185_v4 = vld [vmem:[#allocation2 + $0x3e0] sm:$0xff]  ;;  %327 = vmatpush.msra.mxu0 %v121_v3  ;;  %v122_v3 = vld [vmem:[#allocation2 + $0x1e8] sm:$0xff] }
  0x10   :  { %v241_v5 = vld [vmem:[#allocation2 + $0x5a0] sm:$0xff]  ;;  %347 = vmatpush.msra.mxu1 %v185_v4  ;;  %v186_v4 = vld [vmem:[#allocation2 + $0x3e8] sm:$0xff] }
  0x11   :  { %v309_v6 = vld [vmem:[#allocation2 + $0x7c0] sm:$0xff]  ;;  %369 = vmatpush.msra.mxu2 %v241_v5  ;;  %v310_v5 = vld [vmem:[#allocation2 + $0x7c8] sm:$0xff] }
  0x12   :  { %v117_v7 = vld [vmem:[#allocation2 + $0x1c0] sm:$0xff]  ;;  %388 = vmatpush.msra.mxu3 %v309_v6  ;;  %v242_v6 = vld [vmem:[#allocation2 + $0x5a8] sm:$0xff] }
  0x13   :  { %v181_v8 = vld [vmem:[#allocation2 + $0x3c0] sm:$0xff]  ;;  %328 = vmatpush.msra.mxu0 %v117_v7  ;;  %v118_v7 = vld [vmem:[#allocation2 + $0x1c8] sm:$0xff] }
  0x14   :  { %v305_v9 = vld [vmem:[#allocation2 + $0x7a0] sm:$0xff]  ;;  %348 = vmatpush.msra.mxu1 %v181_v8  ;;  %v182_v8 = vld [vmem:[#allocation2 + $0x3c8] sm:$0xff] }
  0x15   :  { %v113_v10 = vld [vmem:[#allocation2 + $0x1a0] sm:$0xff]  ;;  %389 = vmatpush.msra.mxu3 %v305_v9  ;;  %v306_v9 = vld [vmem:[#allocation2 + $0x7a8] sm:$0xff] }
  0x16   :  { %v237_v11 = vld [vmem:[#allocation2 + $0x580] sm:$0xff]  ;;  %329 = vmatpush.msra.mxu0 %v113_v10  ;;  %v238_v10 = vld [vmem:[#allocation2 + $0x588] sm:$0xff] }
  0x17   :  { %v177_v12 = vld [vmem:[#allocation2 + $0x3a0] sm:$0xff]  ;;  %370 = vmatpush.msra.mxu2 %v237_v11  ;;  %v114_v11 = vld [vmem:[#allocation2 + $0x1a8] sm:$0xff] }
  0x18   :  { %v301_v13 = vld [vmem:[#allocation2 + $0x780] sm:$0xff]  ;;  %349 = vmatpush.msra.mxu1 %v177_v12  ;;  %v178_v12 = vld [vmem:[#allocation2 + $0x3a8] sm:$0xff] }
  0x19   :  { %v109_v14 = vld [vmem:[#allocation2 + $0x180] sm:$0xff]  ;;  %390 = vmatpush.msra.mxu3 %v301_v13  ;;  %v302_v13 = vld [vmem:[#allocation2 + $0x788] sm:$0xff] }
  0x1a   :  { %v173_v15 = vld [vmem:[#allocation2 + $0x380] sm:$0xff]  ;;  %330 = vmatpush.msra.mxu0 %v109_v14  ;;  %v234_v14 = vld [vmem:[#allocation2 + $0x568] sm:$0xff] }
  0x1b   :  { %v233_v16 = vld [vmem:[#allocation2 + $0x560] sm:$0xff]  ;;  %350 = vmatpush.msra.mxu1 %v173_v15  ;;  %v110_v15 = vld [vmem:[#allocation2 + $0x188] sm:$0xff] }
  0x1c   :  { %v297_v17 = vld [vmem:[#allocation2 + $0x760] sm:$0xff]  ;;  %371 = vmatpush.msra.mxu2 %v233_v16  ;;  %v174_v16 = vld [vmem:[#allocation2 + $0x388] sm:$0xff] }
  0x1d   :  { %v105_v18 = vld [vmem:[#allocation2 + $0x160] sm:$0xff]  ;;  %391 = vmatpush.msra.mxu3 %v297_v17  ;;  %v298_v17 = vld [vmem:[#allocation2 + $0x768] sm:$0xff] }
  0x1e   :  { %v169_v19 = vld [vmem:[#allocation2 + $0x360] sm:$0xff]  ;;  %331 = vmatpush.msra.mxu0 %v105_v18  ;;  %v230_v18 = vld [vmem:[#allocation2 + $0x548] sm:$0xff] }
  0x1f   :  { %v229_v20 = vld [vmem:[#allocation2 + $0x540] sm:$0xff]  ;;  %351 = vmatpush.msra.mxu1 %v169_v19  ;;  %v106_v19 = vld [vmem:[#allocation2 + $0x168] sm:$0xff] }
  0x20   :  { %v293_v21 = vld [vmem:[#allocation2 + $0x740] sm:$0xff]  ;;  %372 = vmatpush.msra.mxu2 %v229_v20  ;;  %v170_v20 = vld [vmem:[#allocation2 + $0x368] sm:$0xff] }
  0x21   :  { %v101_v22 = vld [vmem:[#allocation2 + $0x140] sm:$0xff]  ;;  %392 = vmatpush.msra.mxu3 %v293_v21  ;;  %v294_v21 = vld [vmem:[#allocation2 + $0x748] sm:$0xff] }
  0x22   :  { %v165_v23 = vld [vmem:[#allocation2 + $0x340] sm:$0xff]  ;;  %332 = vmatpush.msra.mxu0 %v101_v22  ;;  %v226_v22 = vld [vmem:[#allocation2 + $0x528] sm:$0xff] }
  0x23   :  { %v225_v24 = vld [vmem:[#allocation2 + $0x520] sm:$0xff]  ;;  %352 = vmatpush.msra.mxu1 %v165_v23  ;;  %v102_v23 = vld [vmem:[#allocation2 + $0x148] sm:$0xff] }
  0x24   :  { %v289_v25 = vld [vmem:[#allocation2 + $0x720] sm:$0xff]  ;;  %373 = vmatpush.msra.mxu2 %v225_v24  ;;  %v166_v24 = vld [vmem:[#allocation2 + $0x348] sm:$0xff] }
  0x25   :  { %v97_v26 = vld [vmem:[#allocation2 + $0x120] sm:$0xff]  ;;  %393 = vmatpush.msra.mxu3 %v289_v25  ;;  %v290_v25 = vld [vmem:[#allocation2 + $0x728] sm:$0xff] }
  0x26   :  { %v161_v27 = vld [vmem:[#allocation2 + $0x320] sm:$0xff]  ;;  %333 = vmatpush.msra.mxu0 %v97_v26  ;;  %v222_v26 = vld [vmem:[#allocation2 + $0x508] sm:$0xff] }
  0x27   :  { %v221_v28 = vld [vmem:[#allocation2 + $0x500] sm:$0xff]  ;;  %353 = vmatpush.msra.mxu1 %v161_v27  ;;  %v98_v27 = vld [vmem:[#allocation2 + $0x128] sm:$0xff] }
  0x28   :  { %v285_v29 = vld [vmem:[#allocation2 + $0x700] sm:$0xff]  ;;  %374 = vmatpush.msra.mxu2 %v221_v28  ;;  %v162_v28 = vld [vmem:[#allocation2 + $0x328] sm:$0xff] }
  0x29   :  { %v93_v30 = vld [vmem:[#allocation2 + $0x100] sm:$0xff]  ;;  %394 = vmatpush.msra.mxu3 %v285_v29  ;;  %v286_v29 = vld [vmem:[#allocation2 + $0x708] sm:$0xff] }
  0x2a   :  { %v157_v31 = vld [vmem:[#allocation2 + $0x300] sm:$0xff]  ;;  %334 = vmatpush.msra.mxu0 %v93_v30  ;;  %v218_v30 = vld [vmem:[#allocation2 + $0x4e8] sm:$0xff] }
  0x2b   :  { %v217_v32 = vld [vmem:[#allocation2 + $0x4e0] sm:$0xff]  ;;  %354 = vmatpush.msra.mxu1 %v157_v31  ;;  %v94_v31 = vld [vmem:[#allocation2 + $0x108] sm:$0xff] }
  0x2c   :  { %v281_v33 = vld [vmem:[#allocation2 + $0x6e0] sm:$0xff]  ;;  %375 = vmatpush.msra.mxu2 %v217_v32  ;;  %v158_v32 = vld [vmem:[#allocation2 + $0x308] sm:$0xff] }
  0x2d   :  { %v89_v34 = vld [vmem:[#allocation2 + $0xe0] sm:$0xff]  ;;  %395 = vmatpush.msra.mxu3 %v281_v33  ;;  %v282_v33 = vld [vmem:[#allocation2 + $0x6e8] sm:$0xff] }
  0x2e   :  { %v153_v35 = vld [vmem:[#allocation2 + $0x2e0] sm:$0xff]  ;;  %335 = vmatpush.msra.mxu0 %v89_v34  ;;  %v214_v34 = vld [vmem:[#allocation2 + $0x4c8] sm:$0xff] }
  0x2f   :  { %v213_v36 = vld [vmem:[#allocation2 + $0x4c0] sm:$0xff]  ;;  %355 = vmatpush.msra.mxu1 %v153_v35  ;;  %v90_v35 = vld [vmem:[#allocation2 + $0xe8] sm:$0xff] }
  0x30   :  { %v277_v37 = vld [vmem:[#allocation2 + $0x6c0] sm:$0xff]  ;;  %376 = vmatpush.msra.mxu2 %v213_v36  ;;  %v154_v36 = vld [vmem:[#allocation2 + $0x2e8] sm:$0xff] }
  0x31   :  { %v85_v38 = vld [vmem:[#allocation2 + $0xc0] sm:$0xff]  ;;  %396 = vmatpush.msra.mxu3 %v277_v37  ;;  %v278_v37 = vld [vmem:[#allocation2 + $0x6c8] sm:$0xff] }
  0x32   :  { %v149_v39 = vld [vmem:[#allocation2 + $0x2c0] sm:$0xff]  ;;  %336 = vmatpush.msra.mxu0 %v85_v38  ;;  %v210_v38 = vld [vmem:[#allocation2 + $0x4a8] sm:$0xff] }
  0x33   :  { %v209_v40 = vld [vmem:[#allocation2 + $0x4a0] sm:$0xff]  ;;  %356 = vmatpush.msra.mxu1 %v149_v39  ;;  %v86_v39 = vld [vmem:[#allocation2 + $0xc8] sm:$0xff] }
  0x34   :  { %v273_v41 = vld [vmem:[#allocation2 + $0x6a0] sm:$0xff]  ;;  %377 = vmatpush.msra.mxu2 %v209_v40  ;;  %v150_v40 = vld [vmem:[#allocation2 + $0x2c8] sm:$0xff] }
  0x35   :  { %v81_v42 = vld [vmem:[#allocation2 + $0xa0] sm:$0xff]  ;;  %397 = vmatpush.msra.mxu3 %v273_v41  ;;  %v274_v41 = vld [vmem:[#allocation2 + $0x6a8] sm:$0xff] }
  0x36   :  { %v145_v43 = vld [vmem:[#allocation2 + $0x2a0] sm:$0xff]  ;;  %337 = vmatpush.msra.mxu0 %v81_v42  ;;  %v206_v42 = vld [vmem:[#allocation2 + $0x488] sm:$0xff] }
  0x37   :  { %v205_v44 = vld [vmem:[#allocation2 + $0x480] sm:$0xff]  ;;  %357 = vmatpush.msra.mxu1 %v145_v43  ;;  %v82_v43 = vld [vmem:[#allocation2 + $0xa8] sm:$0xff] }
  0x38   :  { %v269_v45 = vld [vmem:[#allocation2 + $0x680] sm:$0xff]  ;;  %378 = vmatpush.msra.mxu2 %v205_v44  ;;  %v146_v44 = vld [vmem:[#allocation2 + $0x2a8] sm:$0xff] }
  0x39   :  { %v77_v46 = vld [vmem:[#allocation2 + $0x80] sm:$0xff]  ;;  %398 = vmatpush.msra.mxu3 %v269_v45  ;;  %v270_v45 = vld [vmem:[#allocation2 + $0x688] sm:$0xff] }
  0x3a   :  { %v141_v47 = vld [vmem:[#allocation2 + $0x280] sm:$0xff]  ;;  %338 = vmatpush.msra.mxu0 %v77_v46  ;;  %v202_v46 = vld [vmem:[#allocation2 + $0x468] sm:$0xff] }
  0x3b   :  { %v201_v48 = vld [vmem:[#allocation2 + $0x460] sm:$0xff]  ;;  %358 = vmatpush.msra.mxu1 %v141_v47  ;;  %v78_v47 = vld [vmem:[#allocation2 + $0x88] sm:$0xff] }
  0x3c   :  { %v265_v49 = vld [vmem:[#allocation2 + $0x660] sm:$0xff]  ;;  %379 = vmatpush.msra.mxu2 %v201_v48  ;;  %v142_v48 = vld [vmem:[#allocation2 + $0x288] sm:$0xff] }
  0x3d   :  { %v73_v50 = vld [vmem:[#allocation2 + $0x60] sm:$0xff]  ;;  %399 = vmatpush.msra.mxu3 %v265_v49  ;;  %v266_v49 = vld [vmem:[#allocation2 + $0x668] sm:$0xff] }
  0x3e   :  { %v137_v51 = vld [vmem:[#allocation2 + $0x260] sm:$0xff]  ;;  %339 = vmatpush.msra.mxu0 %v73_v50  ;;  %v198_v50 = vld [vmem:[#allocation2 + $0x448] sm:$0xff] }
  0x3f   :  { %v197_v52 = vld [vmem:[#allocation2 + $0x440] sm:$0xff]  ;;  %359 = vmatpush.msra.mxu1 %v137_v51  ;;  %v74_v51 = vld [vmem:[#allocation2 + $0x68] sm:$0xff] }
  0x40   :  { %v261_v53 = vld [vmem:[#allocation2 + $0x640] sm:$0xff]  ;;  %380 = vmatpush.msra.mxu2 %v197_v52  ;;  %v138_v52 = vld [vmem:[#allocation2 + $0x268] sm:$0xff] }
  0x41   :  { %v69_v54 = vld [vmem:[#allocation2 + $0x40] sm:$0xff]  ;;  %400 = vmatpush.msra.mxu3 %v261_v53  ;;  %v262_v53 = vld [vmem:[#allocation2 + $0x648] sm:$0xff] }
  0x42   :  { %v133_v55 = vld [vmem:[#allocation2 + $0x240] sm:$0xff]  ;;  %340 = vmatpush.msra.mxu0 %v69_v54  ;;  %v194_v54 = vld [vmem:[#allocation2 + $0x428] sm:$0xff] }
  0x43   :  { %v193_v56 = vld [vmem:[#allocation2 + $0x420] sm:$0xff]  ;;  %360 = vmatpush.msra.mxu1 %v133_v55  ;;  %v70_v55 = vld [vmem:[#allocation2 + $0x48] sm:$0xff] }
  0x44   :  { %v257_v57 = vld [vmem:[#allocation2 + $0x620] sm:$0xff]  ;;  %381 = vmatpush.msra.mxu2 %v193_v56  ;;  %v134_v56 = vld [vmem:[#allocation2 + $0x248] sm:$0xff] }
  0x45   :  { %v65_v58 = vld [vmem:[#allocation2 + $0x20] sm:$0xff]  ;;  %401 = vmatpush.msra.mxu3 %v257_v57  ;;  %v258_v57 = vld [vmem:[#allocation2 + $0x628] sm:$0xff] }
  0x46   :  { %v129_v59 = vld [vmem:[#allocation2 + $0x220] sm:$0xff]  ;;  %341 = vmatpush.msra.mxu0 %v65_v58  ;;  %v190_v58 = vld [vmem:[#allocation2 + $0x408] sm:$0xff] }
  0x47   :  { %v189_v60 = vld [vmem:[#allocation2 + $0x400] sm:$0xff]  ;;  %361 = vmatpush.msra.mxu1 %v129_v59  ;;  %v66_v59 = vld [vmem:[#allocation2 + $0x28] sm:$0xff] }
  0x48   :  { %v253_v61 = vld [vmem:[#allocation2 + $0x600] sm:$0xff]  ;;  %382 = vmatpush.msra.mxu2 %v189_v60  ;;  %v1398_v60 = vld [vmem:[%s1501_s0 + $0x10] sm:$0x3f] }
  0x49   :  { %v61_v0 = vld [vmem:[#allocation2] sm:$0xff]  ;;  %402 = vmatpush.msra.mxu3 %v253_v61  ;;  %v130_v61 = vld [vmem:[#allocation2 + $0x228] sm:$0xff]  ;;  %383 = vmatmul.f32.vlgmr.msra.gmra.mxu2 %v1398_v60 }
  0x4a   :  { %v125_v1 = vld [vmem:[#allocation2 + $0x200] sm:$0xff]  ;;  %447 = vmatpush.msrb.mxu2 %v250_v62  ;;  %342 = vmatpush.msra.mxu0 %v61_v0  ;;  %v251_v62 = vld [vmem:[#allocation2 + $0x5f0] sm:$0xff]  ;;  %v1403_v0 = vld [vmem:[%s1501_s0] sm:$0x3f] }
  0x4b   :  { %467 = vmatpush.msrb.mxu3 %v314_v63  ;;  %362 = vmatpush.msra.mxu1 %v125_v1  ;;  %v254_v63 = vld [vmem:[#allocation2 + $0x608] sm:$0xff]  ;;  %v1408_v1 = vld [vmem:[%s1501_s0 + $0x18] sm:$0x3f] }
  0x4c   :  { %448 = vmatpush.msrb.mxu2 %v246_v2  ;;  %407 = vmatpush.msrb.mxu0 %v122_v3  ;;  %v247_v2 = vld [vmem:[#allocation2 + $0x5d0] sm:$0xff] }
  0x4d   :  { %427 = vmatpush.msrb.mxu1 %v186_v4  ;;  %468 = vmatpush.msrb.mxu3 %v310_v5  ;;  %v315_v3 = vld [vmem:[#allocation2 + $0x7f0] sm:$0xff]  ;;  %v62_v4 = vld [vmem:[#allocation2 + $0x8] sm:$0xff] }
  0x4e   :  { %449 = vmatpush.msrb.mxu2 %v242_v6  ;;  %408 = vmatpush.msrb.mxu0 %v118_v7  ;;  %v126_v5 = vld [vmem:[#allocation2 + $0x208] sm:$0xff]  ;;  %v1416_v6 = vld [vmem:[%s1501_s0 + $0x8] sm:$0x3f]  ;;  %v123_v7 = vld [vmem:[#allocation2 + $0x1f0] sm:$0xff] }
  0x4f   :  { %428 = vmatpush.msrb.mxu1 %v182_v8  ;;  %469 = vmatpush.msrb.mxu3 %v306_v9  ;;  %v187_v8 = vld [vmem:[#allocation2 + $0x3f0] sm:$0xff] }
  0x50   :  { %450 = vmatpush.msrb.mxu2 %v238_v10  ;;  %409 = vmatpush.msrb.mxu0 %v114_v11  ;;  %v243_v9 = vld [vmem:[#allocation2 + $0x5b0] sm:$0xff] }
  0x51   :  { %429 = vmatpush.msrb.mxu1 %v178_v12  ;;  %470 = vmatpush.msrb.mxu3 %v302_v13  ;;  %v311_v10 = vld [vmem:[#allocation2 + $0x7d0] sm:$0xff] }
  0x52   :  { %451 = vmatpush.msrb.mxu2 %v234_v14  ;;  %410 = vmatpush.msrb.mxu0 %v110_v15  ;;  %v119_v11 = vld [vmem:[#allocation2 + $0x1d0] sm:$0xff] }
  0x53   :  { %430 = vmatpush.msrb.mxu1 %v174_v16  ;;  %471 = vmatpush.msrb.mxu3 %v298_v17  ;;  %v183_v12 = vld [vmem:[#allocation2 + $0x3d0] sm:$0xff] }
  0x54   :  { %452 = vmatpush.msrb.mxu2 %v230_v18  ;;  %411 = vmatpush.msrb.mxu0 %v106_v19  ;;  %v239_v13 = vld [vmem:[#allocation2 + $0x590] sm:$0xff] }
  0x55   :  { %431 = vmatpush.msrb.mxu1 %v170_v20  ;;  %472 = vmatpush.msrb.mxu3 %v294_v21  ;;  %v307_v14 = vld [vmem:[#allocation2 + $0x7b0] sm:$0xff] }
  0x56   :  { %453 = vmatpush.msrb.mxu2 %v226_v22  ;;  %412 = vmatpush.msrb.mxu0 %v102_v23  ;;  %v115_v15 = vld [vmem:[#allocation2 + $0x1b0] sm:$0xff] }
  0x57   :  { %432 = vmatpush.msrb.mxu1 %v166_v24  ;;  %473 = vmatpush.msrb.mxu3 %v290_v25  ;;  %v179_v16 = vld [vmem:[#allocation2 + $0x3b0] sm:$0xff] }
  0x58   :  { %454 = vmatpush.msrb.mxu2 %v222_v26  ;;  %413 = vmatpush.msrb.mxu0 %v98_v27  ;;  %v235_v17 = vld [vmem:[#allocation2 + $0x570] sm:$0xff] }
  0x59   :  { %433 = vmatpush.msrb.mxu1 %v162_v28  ;;  %474 = vmatpush.msrb.mxu3 %v286_v29  ;;  %v303_v18 = vld [vmem:[#allocation2 + $0x790] sm:$0xff] }
  0x5a   :  { %455 = vmatpush.msrb.mxu2 %v218_v30  ;;  %414 = vmatpush.msrb.mxu0 %v94_v31  ;;  %v111_v19 = vld [vmem:[#allocation2 + $0x190] sm:$0xff] }
  0x5b   :  { %434 = vmatpush.msrb.mxu1 %v158_v32  ;;  %475 = vmatpush.msrb.mxu3 %v282_v33  ;;  %v175_v20 = vld [vmem:[#allocation2 + $0x390] sm:$0xff] }
  0x5c   :  { %456 = vmatpush.msrb.mxu2 %v214_v34  ;;  %415 = vmatpush.msrb.mxu0 %v90_v35  ;;  %v231_v21 = vld [vmem:[#allocation2 + $0x550] sm:$0xff] }
  0x5d   :  { %435 = vmatpush.msrb.mxu1 %v154_v36  ;;  %476 = vmatpush.msrb.mxu3 %v278_v37  ;;  %v299_v22 = vld [vmem:[#allocation2 + $0x770] sm:$0xff] }
  0x5e   :  { %457 = vmatpush.msrb.mxu2 %v210_v38  ;;  %416 = vmatpush.msrb.mxu0 %v86_v39  ;;  %v107_v23 = vld [vmem:[#allocation2 + $0x170] sm:$0xff] }
  0x5f   :  { %436 = vmatpush.msrb.mxu1 %v150_v40  ;;  %477 = vmatpush.msrb.mxu3 %v274_v41  ;;  %v171_v24 = vld [vmem:[#allocation2 + $0x370] sm:$0xff] }
  0x60   :  { %458 = vmatpush.msrb.mxu2 %v206_v42  ;;  %417 = vmatpush.msrb.mxu0 %v82_v43  ;;  %v227_v25 = vld [vmem:[#allocation2 + $0x530] sm:$0xff] }
  0x61   :  { %437 = vmatpush.msrb.mxu1 %v146_v44  ;;  %478 = vmatpush.msrb.mxu3 %v270_v45  ;;  %v295_v26 = vld [vmem:[#allocation2 + $0x750] sm:$0xff] }
  0x62   :  { %459 = vmatpush.msrb.mxu2 %v202_v46  ;;  %418 = vmatpush.msrb.mxu0 %v78_v47  ;;  %v103_v27 = vld [vmem:[#allocation2 + $0x150] sm:$0xff] }
  0x63   :  { %438 = vmatpush.msrb.mxu1 %v142_v48  ;;  %479 = vmatpush.msrb.mxu3 %v266_v49  ;;  %v167_v28 = vld [vmem:[#allocation2 + $0x350] sm:$0xff] }
  0x64   :  { %460 = vmatpush.msrb.mxu2 %v198_v50  ;;  %419 = vmatpush.msrb.mxu0 %v74_v51  ;;  %v223_v29 = vld [vmem:[#allocation2 + $0x510] sm:$0xff] }
  0x65   :  { %439 = vmatpush.msrb.mxu1 %v138_v52  ;;  %480 = vmatpush.msrb.mxu3 %v262_v53  ;;  %v291_v30 = vld [vmem:[#allocation2 + $0x730] sm:$0xff] }
  0x66   :  { %461 = vmatpush.msrb.mxu2 %v194_v54  ;;  %420 = vmatpush.msrb.mxu0 %v70_v55  ;;  %v99_v31 = vld [vmem:[#allocation2 + $0x130] sm:$0xff] }
  0x67   :  { %440 = vmatpush.msrb.mxu1 %v134_v56  ;;  %481 = vmatpush.msrb.mxu3 %v258_v57  ;;  %v163_v32 = vld [vmem:[#allocation2 + $0x330] sm:$0xff] }
  0x68   :  { %462 = vmatpush.msrb.mxu2 %v190_v58  ;;  %421 = vmatpush.msrb.mxu0 %v66_v59  ;;  %v219_v33 = vld [vmem:[#allocation2 + $0x4f0] sm:$0xff] }
  0x69   :  { %441 = vmatpush.msrb.mxu1 %v130_v61  ;;  %482 = vmatpush.msrb.mxu3 %v254_v63  ;;  %v287_v34 = vld [vmem:[#allocation2 + $0x710] sm:$0xff] }
  0x6a   :  { %527 = vmatpush.msra.mxu2 %v251_v62  ;;  %343 = vmatmul.f32.vlgmr.msra.gmra.mxu0 %v1403_v0  ;;  %v95_v35 = vld [vmem:[#allocation2 + $0x110] sm:$0xff] }
  0x6b   :  { %403 = vmatmul.f32.vlgmr.msra.gmra.mxu3 %v1408_v1  ;;  %422 = vmatpush.msrb.mxu0 %v62_v4  ;;  %v159_v36 = vld [vmem:[#allocation2 + $0x310] sm:$0xff] }
  0x6c   :  { %528 = vmatpush.msra.mxu2 %v247_v2  ;;  %547 = vmatpush.msra.mxu3 %v315_v3  ;;  %v215_v37 = vld [vmem:[#allocation2 + $0x4d0] sm:$0xff]  ;;  %v252_v2 = vld [vmem:[#allocation2 + $0x5f8] sm:$0xff] }
  0x6d   :  { %442 = vmatpush.msrb.mxu1 %v126_v5  ;;  %487 = vmatpush.msra.mxu0 %v123_v7  ;;  %v283_v38 = vld [vmem:[#allocation2 + $0x6f0] sm:$0xff]  ;;  %v248_v7 = vld [vmem:[#allocation2 + $0x5d8] sm:$0xff] }
  0x6e   :  { %363 = vmatmul.f32.vlgmr.msra.gmra.mxu1 %v1416_v6  ;;  %529 = vmatpush.msra.mxu2 %v243_v9  ;;  %v91_v39 = vld [vmem:[#allocation2 + $0xf0] sm:$0xff] }
  0x6f   :  { %507 = vmatpush.msra.mxu1 %v187_v8  ;;  %548 = vmatpush.msra.mxu3 %v311_v10  ;;  %v155_v40 = vld [vmem:[#allocation2 + $0x2f0] sm:$0xff]  ;;  %v316_v8 = vld [vmem:[#allocation2 + $0x7f8] sm:$0xff] }
  0x70   :  { %488 = vmatpush.msra.mxu0 %v119_v11  ;;  %530 = vmatpush.msra.mxu2 %v239_v13  ;;  %v211_v41 = vld [vmem:[#allocation2 + $0x4b0] sm:$0xff]  ;;  %v124_v11 = vld [vmem:[#allocation2 + $0x1f8] sm:$0xff] }
  0x71   :  { %508 = vmatpush.msra.mxu1 %v183_v12  ;;  %549 = vmatpush.msra.mxu3 %v307_v14  ;;  %v279_v42 = vld [vmem:[#allocation2 + $0x6d0] sm:$0xff]  ;;  %v188_v12 = vld [vmem:[#allocation2 + $0x3f8] sm:$0xff] }
  0x72   :  { %489 = vmatpush.msra.mxu0 %v115_v15  ;;  %531 = vmatpush.msra.mxu2 %v235_v17  ;;  %v87_v43 = vld [vmem:[#allocation2 + $0xd0] sm:$0xff]  ;;  %v244_v13 = vld [vmem:[#allocation2 + $0x5b8] sm:$0xff] }
  0x73   :  { %509 = vmatpush.msra.mxu1 %v179_v16  ;;  %550 = vmatpush.msra.mxu3 %v303_v18  ;;  %v151_v44 = vld [vmem:[#allocation2 + $0x2d0] sm:$0xff]  ;;  %v312_v14 = vld [vmem:[#allocation2 + $0x7d8] sm:$0xff] }
  0x74   :  { %490 = vmatpush.msra.mxu0 %v111_v19  ;;  %532 = vmatpush.msra.mxu2 %v231_v21  ;;  %v207_v45 = vld [vmem:[#allocation2 + $0x490] sm:$0xff]  ;;  %v120_v15 = vld [vmem:[#allocation2 + $0x1d8] sm:$0xff] }
  0x75   :  { %510 = vmatpush.msra.mxu1 %v175_v20  ;;  %551 = vmatpush.msra.mxu3 %v299_v22  ;;  %v275_v46 = vld [vmem:[#allocation2 + $0x6b0] sm:$0xff]  ;;  %v184_v16 = vld [vmem:[#allocation2 + $0x3d8] sm:$0xff] }
  0x76   :  { %491 = vmatpush.msra.mxu0 %v107_v23  ;;  %533 = vmatpush.msra.mxu2 %v227_v25  ;;  %v83_v47 = vld [vmem:[#allocation2 + $0xb0] sm:$0xff]  ;;  %v240_v17 = vld [vmem:[#allocation2 + $0x598] sm:$0xff] }
  0x77   :  { %511 = vmatpush.msra.mxu1 %v171_v24  ;;  %552 = vmatpush.msra.mxu3 %v295_v26  ;;  %v147_v48 = vld [vmem:[#allocation2 + $0x2b0] sm:$0xff]  ;;  %v308_v18 = vld [vmem:[#allocation2 + $0x7b8] sm:$0xff] }
  0x78   :  { %492 = vmatpush.msra.mxu0 %v103_v27  ;;  %534 = vmatpush.msra.mxu2 %v223_v29  ;;  %v203_v49 = vld [vmem:[#allocation2 + $0x470] sm:$0xff]  ;;  %v116_v19 = vld [vmem:[#allocation2 + $0x1b8] sm:$0xff] }
  0x79   :  { %512 = vmatpush.msra.mxu1 %v167_v28  ;;  %553 = vmatpush.msra.mxu3 %v291_v30  ;;  %v271_v50 = vld [vmem:[#allocation2 + $0x690] sm:$0xff]  ;;  %v180_v20 = vld [vmem:[#allocation2 + $0x3b8] sm:$0xff] }
  0x7a   :  { %493 = vmatpush.msra.mxu0 %v99_v31  ;;  %535 = vmatpush.msra.mxu2 %v219_v33  ;;  %v79_v51 = vld [vmem:[#allocation2 + $0x90] sm:$0xff]  ;;  %v236_v21 = vld [vmem:[#allocation2 + $0x578] sm:$0xff] }
  0x7b   :  { %513 = vmatpush.msra.mxu1 %v163_v32  ;;  %554 = vmatpush.msra.mxu3 %v287_v34  ;;  %v143_v52 = vld [vmem:[#allocation2 + $0x290] sm:$0xff]  ;;  %v304_v22 = vld [vmem:[#allocation2 + $0x798] sm:$0xff] }
  0x7c   :  { %494 = vmatpush.msra.mxu0 %v95_v35  ;;  %536 = vmatpush.msra.mxu2 %v215_v37  ;;  %v199_v53 = vld [vmem:[#allocation2 + $0x450] sm:$0xff]  ;;  %v112_v23 = vld [vmem:[#allocation2 + $0x198] sm:$0xff] }
  0x7d   :  { %514 = vmatpush.msra.mxu1 %v159_v36  ;;  %555 = vmatpush.msra.mxu3 %v283_v38  ;;  %v267_v54 = vld [vmem:[#allocation2 + $0x670] sm:$0xff]  ;;  %v176_v24 = vld [vmem:[#allocation2 + $0x398] sm:$0xff] }
  0x7e   :  { %495 = vmatpush.msra.mxu0 %v91_v39  ;;  %537 = vmatpush.msra.mxu2 %v211_v41  ;;  %v75_v55 = vld [vmem:[#allocation2 + $0x70] sm:$0xff]  ;;  %v232_v25 = vld [vmem:[#allocation2 + $0x558] sm:$0xff] }
  0x7f   :  { %515 = vmatpush.msra.mxu1 %v155_v40  ;;  %556 = vmatpush.msra.mxu3 %v279_v42  ;;  %v139_v56 = vld [vmem:[#allocation2 + $0x270] sm:$0xff]  ;;  %v300_v26 = vld [vmem:[#allocation2 + $0x778] sm:$0xff] }
  0x80   :  { %496 = vmatpush.msra.mxu0 %v87_v43  ;;  %538 = vmatpush.msra.mxu2 %v207_v45  ;;  %v195_v57 = vld [vmem:[#allocation2 + $0x430] sm:$0xff]  ;;  %v108_v27 = vld [vmem:[#allocation2 + $0x178] sm:$0xff] }
  0x81   :  { %516 = vmatpush.msra.mxu1 %v151_v44  ;;  %557 = vmatpush.msra.mxu3 %v275_v46  ;;  %v263_v58 = vld [vmem:[#allocation2 + $0x650] sm:$0xff]  ;;  %v172_v28 = vld [vmem:[#allocation2 + $0x378] sm:$0xff] }
  0x82   :  { %497 = vmatpush.msra.mxu0 %v83_v47  ;;  %539 = vmatpush.msra.mxu2 %v203_v49  ;;  %v71_v59 = vld [vmem:[#allocation2 + $0x50] sm:$0xff]  ;;  %v228_v29 = vld [vmem:[#allocation2 + $0x538] sm:$0xff] }
  0x83   :  { %517 = vmatpush.msra.mxu1 %v147_v48  ;;  %558 = vmatpush.msra.mxu3 %v271_v50  ;;  %v135_v61 = vld [vmem:[#allocation2 + $0x250] sm:$0xff]  ;;  %v296_v30 = vld [vmem:[#allocation2 + $0x758] sm:$0xff] }
  0x84   :  { %498 = vmatpush.msra.mxu0 %v79_v51  ;;  %540 = vmatpush.msra.mxu2 %v199_v53  ;;  %v191_v62 = vld [vmem:[#allocation2 + $0x410] sm:$0xff]  ;;  %v104_v31 = vld [vmem:[#allocation2 + $0x158] sm:$0xff] }
  0x85   :  { %518 = vmatpush.msra.mxu1 %v143_v52  ;;  %559 = vmatpush.msra.mxu3 %v267_v54  ;;  %v259_v63 = vld [vmem:[#allocation2 + $0x630] sm:$0xff]  ;;  %v168_v32 = vld [vmem:[#allocation2 + $0x358] sm:$0xff] }
  0x86   :  { %499 = vmatpush.msra.mxu0 %v75_v55  ;;  %541 = vmatpush.msra.mxu2 %v195_v57  ;;  %v67_v3 = vld [vmem:[#allocation2 + $0x30] sm:$0xff]  ;;  %v224_v33 = vld [vmem:[#allocation2 + $0x518] sm:$0xff] }
  0x87   :  { %519 = vmatpush.msra.mxu1 %v139_v56  ;;  %560 = vmatpush.msra.mxu3 %v263_v58  ;;  %v131_v4 = vld [vmem:[#allocation2 + $0x230] sm:$0xff]  ;;  %v292_v34 = vld [vmem:[#allocation2 + $0x738] sm:$0xff] }
  0x88   :  { %500 = vmatpush.msra.mxu0 %v71_v59  ;;  %542 = vmatpush.msra.mxu2 %v191_v62  ;;  %v255_v5 = vld [vmem:[#allocation2 + $0x610] sm:$0xff]  ;;  %v100_v35 = vld [vmem:[#allocation2 + $0x138] sm:$0xff] }
  0x89   :  { %520 = vmatpush.msra.mxu1 %v135_v61  ;;  %561 = vmatpush.msra.mxu3 %v259_v63  ;;  %v63_v9 = vld [vmem:[#allocation2 + $0x10] sm:$0xff]  ;;  %v164_v36 = vld [vmem:[#allocation2 + $0x338] sm:$0xff] }
  0x8a   :  { %463 = vmatmul.f32.vlgmr.msrb.gmra.mxu2 %v1398_v60  ;;  %501 = vmatpush.msra.mxu0 %v67_v3  ;;  %v127_v10 = vld [vmem:[#allocation2 + $0x210] sm:$0xff]  ;;  %v220_v37 = vld [vmem:[#allocation2 + $0x4f8] sm:$0xff] }
  0x8b   :  { %607 = vmatpush.msrb.mxu2 %v252_v2  ;;  %521 = vmatpush.msra.mxu1 %v131_v4  ;;  %v288_v38 = vld [vmem:[#allocation2 + $0x718] sm:$0xff] }
  0x8c   :  { %562 = vmatpush.msra.mxu3 %v255_v5  ;;  %423 = vmatmul.f32.vlgmr.msrb.gmra.mxu0 %v1403_v0  ;;  %v96_v39 = vld [vmem:[#allocation2 + $0x118] sm:$0xff] }
  0x8d   :  { %483 = vmatmul.f32.vlgmr.msrb.gmra.mxu3 %v1408_v1  ;;  %608 = vmatpush.msrb.mxu2 %v248_v7  ;;  %v160_v40 = vld [vmem:[#allocation2 + $0x318] sm:$0xff]  ;;  %v868_v7 = vld [vmem:[#allocation4 + $0x5e0] sm:$0xff] }
  0x8e   :  { %627 = vmatpush.msrb.mxu3 %v316_v8  ;;  %502 = vmatpush.msra.mxu0 %v63_v9  ;;  %v216_v41 = vld [vmem:[#allocation2 + $0x4d8] sm:$0xff] }
  0x8f   :  { %522 = vmatpush.msra.mxu1 %v127_v10  ;;  %609 = vmatpush.msrb.mxu2 %v244_v13  ;;  %v284_v42 = vld [vmem:[#allocation2 + $0x6f8] sm:$0xff] }
  0x90   :  { %443 = vmatmul.f32.vlgmr.msrb.gmra.mxu1 %v1416_v6  ;;  %567 = vmatpush.msrb.mxu0 %v124_v11  ;;  %v92_v43 = vld [vmem:[#allocation2 + $0xf8] sm:$0xff]  ;;  %v864_v11 = vld [vmem:[#allocation4 + $0x5c0] sm:$0xff] }
  0x91   :  { %587 = vmatpush.msrb.mxu1 %v188_v12  ;;  %628 = vmatpush.msrb.mxu3 %v312_v14  ;;  %v156_v44 = vld [vmem:[#allocation2 + $0x2f8] sm:$0xff]  ;;  %v932_v12 = vld [vmem:[#allocation4 + $0x7e0] sm:$0xff] }
  0x92   :  { %568 = vmatpush.msrb.mxu0 %v120_v15  ;;  %610 = vmatpush.msrb.mxu2 %v240_v17  ;;  %v212_v45 = vld [vmem:[#allocation2 + $0x4b8] sm:$0xff]  ;;  %v740_v15 = vld [vmem:[#allocation4 + $0x1e0] sm:$0xff] }
  0x93   :  { %588 = vmatpush.msrb.mxu1 %v184_v16  ;;  %629 = vmatpush.msrb.mxu3 %v308_v18  ;;  %v280_v46 = vld [vmem:[#allocation2 + $0x6d8] sm:$0xff]  ;;  %v804_v16 = vld [vmem:[#allocation4 + $0x3e0] sm:$0xff] }
  0x94   :  { %569 = vmatpush.msrb.mxu0 %v116_v19  ;;  %611 = vmatpush.msrb.mxu2 %v236_v21  ;;  %v88_v47 = vld [vmem:[#allocation2 + $0xd8] sm:$0xff]  ;;  %v860_v17 = vld [vmem:[#allocation4 + $0x5a0] sm:$0xff] }
  0x95   :  { %589 = vmatpush.msrb.mxu1 %v180_v20  ;;  %630 = vmatpush.msrb.mxu3 %v304_v22  ;;  %v152_v48 = vld [vmem:[#allocation2 + $0x2d8] sm:$0xff]  ;;  %v928_v18 = vld [vmem:[#allocation4 + $0x7c0] sm:$0xff] }
  0x96   :  { %570 = vmatpush.msrb.mxu0 %v112_v23  ;;  %612 = vmatpush.msrb.mxu2 %v232_v25  ;;  %v208_v49 = vld [vmem:[#allocation2 + $0x498] sm:$0xff]  ;;  %v736_v19 = vld [vmem:[#allocation4 + $0x1c0] sm:$0xff] }
  0x97   :  { %590 = vmatpush.msrb.mxu1 %v176_v24  ;;  %631 = vmatpush.msrb.mxu3 %v300_v26  ;;  %v276_v50 = vld [vmem:[#allocation2 + $0x6b8] sm:$0xff]  ;;  %v800_v20 = vld [vmem:[#allocation4 + $0x3c0] sm:$0xff] }
  0x98   :  { %571 = vmatpush.msrb.mxu0 %v108_v27  ;;  %613 = vmatpush.msrb.mxu2 %v228_v29  ;;  %v84_v51 = vld [vmem:[#allocation2 + $0xb8] sm:$0xff]  ;;  %v856_v21 = vld [vmem:[#allocation4 + $0x580] sm:$0xff] }
  0x99   :  { %591 = vmatpush.msrb.mxu1 %v172_v28  ;;  %632 = vmatpush.msrb.mxu3 %v296_v30  ;;  %v148_v52 = vld [vmem:[#allocation2 + $0x2b8] sm:$0xff]  ;;  %v924_v22 = vld [vmem:[#allocation4 + $0x7a0] sm:$0xff] }
  0x9a   :  { %572 = vmatpush.msrb.mxu0 %v104_v31  ;;  %614 = vmatpush.msrb.mxu2 %v224_v33  ;;  %v204_v53 = vld [vmem:[#allocation2 + $0x478] sm:$0xff]  ;;  %v732_v23 = vld [vmem:[#allocation4 + $0x1a0] sm:$0xff] }
  0x9b   :  { %592 = vmatpush.msrb.mxu1 %v168_v32  ;;  %633 = vmatpush.msrb.mxu3 %v292_v34  ;;  %v272_v54 = vld [vmem:[#allocation2 + $0x698] sm:$0xff]  ;;  %v796_v24 = vld [vmem:[#allocation4 + $0x3a0] sm:$0xff] }
  0x9c   :  { %573 = vmatpush.msrb.mxu0 %v100_v35  ;;  %615 = vmatpush.msrb.mxu2 %v220_v37  ;;  %v80_v55 = vld [vmem:[#allocation2 + $0x98] sm:$0xff]  ;;  %v852_v25 = vld [vmem:[#allocation4 + $0x560] sm:$0xff] }
  0x9d   :  { %593 = vmatpush.msrb.mxu1 %v164_v36  ;;  %634 = vmatpush.msrb.mxu3 %v288_v38  ;;  %v144_v56 = vld [vmem:[#allocation2 + $0x298] sm:$0xff]  ;;  %v920_v26 = vld [vmem:[#allocation4 + $0x780] sm:$0xff] }
  0x9e   :  { %574 = vmatpush.msrb.mxu0 %v96_v39  ;;  %616 = vmatpush.msrb.mxu2 %v216_v41  ;;  %v200_v57 = vld [vmem:[#allocation2 + $0x458] sm:$0xff]  ;;  %v728_v27 = vld [vmem:[#allocation4 + $0x180] sm:$0xff] }
  0x9f   :  { %594 = vmatpush.msrb.mxu1 %v160_v40  ;;  %635 = vmatpush.msrb.mxu3 %v284_v42  ;;  %v268_v58 = vld [vmem:[#allocation2 + $0x678] sm:$0xff]  ;;  %v792_v28 = vld [vmem:[#allocation4 + $0x380] sm:$0xff] }
  0xa0   :  { %575 = vmatpush.msrb.mxu0 %v92_v43  ;;  %617 = vmatpush.msrb.mxu2 %v212_v45  ;;  %v76_v59 = vld [vmem:[#allocation2 + $0x78] sm:$0xff]  ;;  %v848_v29 = vld [vmem:[#allocation4 + $0x540] sm:$0xff] }
  0xa1   :  { %595 = vmatpush.msrb.mxu1 %v156_v44  ;;  %636 = vmatpush.msrb.mxu3 %v280_v46  ;;  %v140_v61 = vld [vmem:[#allocation2 + $0x278] sm:$0xff]  ;;  %v916_v30 = vld [vmem:[#allocation4 + $0x760] sm:$0xff] }
  0xa2   :  { %576 = vmatpush.msrb.mxu0 %v88_v47  ;;  %618 = vmatpush.msrb.mxu2 %v208_v49  ;;  %v196_v62 = vld [vmem:[#allocation2 + $0x438] sm:$0xff]  ;;  %v724_v31 = vld [vmem:[#allocation4 + $0x160] sm:$0xff] }
  0xa3   :  { %596 = vmatpush.msrb.mxu1 %v152_v48  ;;  %637 = vmatpush.msrb.mxu3 %v276_v50  ;;  %v264_v63 = vld [vmem:[#allocation2 + $0x658] sm:$0xff]  ;;  %v788_v32 = vld [vmem:[#allocation4 + $0x360] sm:$0xff] }
  0xa4   :  { %577 = vmatpush.msrb.mxu0 %v84_v51  ;;  %619 = vmatpush.msrb.mxu2 %v204_v53  ;;  %v72_v2 = vld [vmem:[#allocation2 + $0x58] sm:$0xff]  ;;  %v844_v33 = vld [vmem:[#allocation4 + $0x520] sm:$0xff] }
  0xa5   :  { %597 = vmatpush.msrb.mxu1 %v148_v52  ;;  %638 = vmatpush.msrb.mxu3 %v272_v54  ;;  %v136_v3 = vld [vmem:[#allocation2 + $0x258] sm:$0xff]  ;;  %v912_v34 = vld [vmem:[#allocation4 + $0x740] sm:$0xff] }
  0xa6   :  { %578 = vmatpush.msrb.mxu0 %v80_v55  ;;  %620 = vmatpush.msrb.mxu2 %v200_v57  ;;  %v192_v4 = vld [vmem:[#allocation2 + $0x418] sm:$0xff]  ;;  %v720_v35 = vld [vmem:[#allocation4 + $0x140] sm:$0xff] }
  0xa7   :  { %598 = vmatpush.msrb.mxu1 %v144_v56  ;;  %639 = vmatpush.msrb.mxu3 %v268_v58  ;;  %v260_v5 = vld [vmem:[#allocation2 + $0x638] sm:$0xff]  ;;  %v784_v36 = vld [vmem:[#allocation4 + $0x340] sm:$0xff] }
  0xa8   :  { %579 = vmatpush.msrb.mxu0 %v76_v59  ;;  %621 = vmatpush.msrb.mxu2 %v196_v62  ;;  %v68_v8 = vld [vmem:[#allocation2 + $0x38] sm:$0xff]  ;;  %v840_v37 = vld [vmem:[#allocation4 + $0x500] sm:$0xff] }
  0xa9   :  { %599 = vmatpush.msrb.mxu1 %v140_v61  ;;  %640 = vmatpush.msrb.mxu3 %v264_v63  ;;  %v132_v9 = vld [vmem:[#allocation2 + $0x238] sm:$0xff]  ;;  %v908_v38 = vld [vmem:[#allocation4 + $0x720] sm:$0xff] }
  0xaa   :  { %580 = vmatpush.msrb.mxu0 %v72_v2  ;;  %622 = vmatpush.msrb.mxu2 %v192_v4  ;;  %v256_v10 = vld [vmem:[#allocation2 + $0x618] sm:$0xff]  ;;  %v716_v39 = vld [vmem:[#allocation4 + $0x120] sm:$0xff] }
  0xab   :  { %600 = vmatpush.msrb.mxu1 %v136_v3  ;;  %641 = vmatpush.msrb.mxu3 %v260_v5  ;;  %v64_v13 = vld [vmem:[#allocation2 + $0x18] sm:$0xff]  ;;  %v780_v40 = vld [vmem:[#allocation4 + $0x320] sm:$0xff] }
  0xac   :  { %543 = vmatmul.f32.vlgmr.msra.gmra.mxu2 %v1398_v60  ;;  %581 = vmatpush.msrb.mxu0 %v68_v8  ;;  %v128_v14 = vld [vmem:[#allocation2 + $0x218] sm:$0xff]  ;;  %v836_v41 = vld [vmem:[#allocation4 + $0x4e0] sm:$0xff] }
  0xad   :  { %976 = vmatpush.msra.mxu2 %v868_v7  ;;  %601 = vmatpush.msrb.mxu1 %v132_v9  ;;  %v904_v42 = vld [vmem:[#allocation4 + $0x700] sm:$0xff] }
  0xae   :  { %642 = vmatpush.msrb.mxu3 %v256_v10  ;;  %503 = vmatmul.f32.vlgmr.msra.gmra.mxu0 %v1403_v0  ;;  %v712_v43 = vld [vmem:[#allocation4 + $0x100] sm:$0xff] }
  0xaf   :  { %563 = vmatmul.f32.vlgmr.msra.gmra.mxu3 %v1408_v1  ;;  %977 = vmatpush.msra.mxu2 %v864_v11  ;;  %v776_v44 = vld [vmem:[#allocation4 + $0x300] sm:$0xff]  ;;  %v869_v11 = vld [vmem:[#allocation4 + $0x5e8] sm:$0xff] }
  0xb0   :  { %996 = vmatpush.msra.mxu3 %v932_v12  ;;  %582 = vmatpush.msrb.mxu0 %v64_v13  ;;  %v832_v45 = vld [vmem:[#allocation4 + $0x4c0] sm:$0xff] }
  0xb1   :  { %602 = vmatpush.msrb.mxu1 %v128_v14  ;;  %978 = vmatpush.msra.mxu2 %v860_v17  ;;  %v900_v46 = vld [vmem:[#allocation4 + $0x6e0] sm:$0xff] }
  0xb2   :  { %523 = vmatmul.f32.vlgmr.msra.gmra.mxu1 %v1416_v6  ;;  %936 = vmatpush.msra.mxu0 %v740_v15  ;;  %v708_v47 = vld [vmem:[#allocation4 + $0xe0] sm:$0xff]  ;;  %v865_v15 = vld [vmem:[#allocation4 + $0x5c8] sm:$0xff] }
  0xb3   :  { %956 = vmatpush.msra.mxu1 %v804_v16  ;;  %997 = vmatpush.msra.mxu3 %v928_v18  ;;  %v772_v48 = vld [vmem:[#allocation4 + $0x2e0] sm:$0xff]  ;;  %v933_v16 = vld [vmem:[#allocation4 + $0x7e8] sm:$0xff] }
  0xb4   :  { %937 = vmatpush.msra.mxu0 %v736_v19  ;;  %979 = vmatpush.msra.mxu2 %v856_v21  ;;  %v828_v49 = vld [vmem:[#allocation4 + $0x4a0] sm:$0xff]  ;;  %v741_v19 = vld [vmem:[#allocation4 + $0x1e8] sm:$0xff] }
  0xb5   :  { %957 = vmatpush.msra.mxu1 %v800_v20  ;;  %998 = vmatpush.msra.mxu3 %v924_v22  ;;  %v896_v50 = vld [vmem:[#allocation4 + $0x6c0] sm:$0xff]  ;;  %v805_v20 = vld [vmem:[#allocation4 + $0x3e8] sm:$0xff] }
  0xb6   :  { %938 = vmatpush.msra.mxu0 %v732_v23  ;;  %980 = vmatpush.msra.mxu2 %v852_v25  ;;  %v704_v51 = vld [vmem:[#allocation4 + $0xc0] sm:$0xff]  ;;  %v861_v21 = vld [vmem:[#allocation4 + $0x5a8] sm:$0xff] }
  0xb7   :  { %958 = vmatpush.msra.mxu1 %v796_v24  ;;  %999 = vmatpush.msra.mxu3 %v920_v26  ;;  %v768_v52 = vld [vmem:[#allocation4 + $0x2c0] sm:$0xff]  ;;  %v929_v22 = vld [vmem:[#allocation4 + $0x7c8] sm:$0xff] }
  0xb8   :  { %939 = vmatpush.msra.mxu0 %v728_v27  ;;  %981 = vmatpush.msra.mxu2 %v848_v29  ;;  %v824_v53 = vld [vmem:[#allocation4 + $0x480] sm:$0xff]  ;;  %v737_v23 = vld [vmem:[#allocation4 + $0x1c8] sm:$0xff] }
  0xb9   :  { %959 = vmatpush.msra.mxu1 %v792_v28  ;;  %1000 = vmatpush.msra.mxu3 %v916_v30  ;;  %v892_v54 = vld [vmem:[#allocation4 + $0x6a0] sm:$0xff]  ;;  %v801_v24 = vld [vmem:[#allocation4 + $0x3c8] sm:$0xff] }
  0xba   :  { %940 = vmatpush.msra.mxu0 %v724_v31  ;;  %982 = vmatpush.msra.mxu2 %v844_v33  ;;  %v700_v55 = vld [vmem:[#allocation4 + $0xa0] sm:$0xff]  ;;  %v857_v25 = vld [vmem:[#allocation4 + $0x588] sm:$0xff] }
  0xbb   :  { %960 = vmatpush.msra.mxu1 %v788_v32  ;;  %1001 = vmatpush.msra.mxu3 %v912_v34  ;;  %v764_v56 = vld [vmem:[#allocation4 + $0x2a0] sm:$0xff]  ;;  %v925_v26 = vld [vmem:[#allocation4 + $0x7a8] sm:$0xff] }
  0xbc   :  { %941 = vmatpush.msra.mxu0 %v720_v35  ;;  %983 = vmatpush.msra.mxu2 %v840_v37  ;;  %v820_v57 = vld [vmem:[#allocation4 + $0x460] sm:$0xff]  ;;  %v797_v27 = vld [vmem:[#allocation4 + $0x3a8] sm:$0xff] }
  0xbd   :  { %961 = vmatpush.msra.mxu1 %v784_v36  ;;  %1002 = vmatpush.msra.mxu3 %v908_v38  ;;  %v888_v58 = vld [vmem:[#allocation4 + $0x680] sm:$0xff]  ;;  %v853_v28 = vld [vmem:[#allocation4 + $0x568] sm:$0xff] }
  0xbe   :  { %942 = vmatpush.msra.mxu0 %v716_v39  ;;  %984 = vmatpush.msra.mxu2 %v836_v41  ;;  %v696_v59 = vld [vmem:[#allocation4 + $0x80] sm:$0xff]  ;;  %v921_v29 = vld [vmem:[#allocation4 + $0x788] sm:$0xff] }
  0xbf   :  { %962 = vmatpush.msra.mxu1 %v780_v40  ;;  %1003 = vmatpush.msra.mxu3 %v904_v42  ;;  %v760_v61 = vld [vmem:[#allocation4 + $0x280] sm:$0xff]  ;;  %v729_v30 = vld [vmem:[#allocation4 + $0x188] sm:$0xff] }
  0xc0   :  { %943 = vmatpush.msra.mxu0 %v712_v43  ;;  %985 = vmatpush.msra.mxu2 %v832_v45  ;;  %v816_v62 = vld [vmem:[#allocation4 + $0x440] sm:$0xff]  ;;  %v793_v31 = vld [vmem:[#allocation4 + $0x388] sm:$0xff] }
  0xc1   :  { %963 = vmatpush.msra.mxu1 %v776_v44  ;;  %1004 = vmatpush.msra.mxu3 %v900_v46  ;;  %v884_v63 = vld [vmem:[#allocation4 + $0x660] sm:$0xff]  ;;  %v849_v32 = vld [vmem:[#allocation4 + $0x548] sm:$0xff] }
  0xc2   :  { %944 = vmatpush.msra.mxu0 %v708_v47  ;;  %986 = vmatpush.msra.mxu2 %v828_v49  ;;  %v692_v2 = vld [vmem:[#allocation4 + $0x60] sm:$0xff]  ;;  %v725_v33 = vld [vmem:[#allocation4 + $0x168] sm:$0xff] }
  0xc3   :  { %964 = vmatpush.msra.mxu1 %v772_v48  ;;  %1005 = vmatpush.msra.mxu3 %v896_v50  ;;  %v756_v3 = vld [vmem:[#allocation4 + $0x260] sm:$0xff]  ;;  %v789_v34 = vld [vmem:[#allocation4 + $0x368] sm:$0xff] }
  0xc4   :  { %945 = vmatpush.msra.mxu0 %v704_v51  ;;  %987 = vmatpush.msra.mxu2 %v824_v53  ;;  %v812_v4 = vld [vmem:[#allocation4 + $0x420] sm:$0xff]  ;;  %v845_v35 = vld [vmem:[#allocation4 + $0x528] sm:$0xff] }
  0xc5   :  { %965 = vmatpush.msra.mxu1 %v768_v52  ;;  %1006 = vmatpush.msra.mxu3 %v892_v54  ;;  %v880_v5 = vld [vmem:[#allocation4 + $0x640] sm:$0xff]  ;;  %v913_v36 = vld [vmem:[#allocation4 + $0x748] sm:$0xff]  ;;  %v1434_v52 = vld [vmem:[%s1504_s3] sm:$0xf] }
  0xc6   :  { %946 = vmatpush.msra.mxu0 %v700_v55  ;;  %988 = vmatpush.msra.mxu2 %v820_v57  ;;  %v688_v7 = vld [vmem:[#allocation4 + $0x40] sm:$0xff]  ;;  %v721_v37 = vld [vmem:[#allocation4 + $0x148] sm:$0xff] }
  0xc7   :  { %966 = vmatpush.msra.mxu1 %v764_v56  ;;  %1007 = vmatpush.msra.mxu3 %v888_v58  ;;  %v752_v8 = vld [vmem:[#allocation4 + $0x240] sm:$0xff]  ;;  %v785_v38 = vld [vmem:[#allocation4 + $0x348] sm:$0xff]  ;;  %v319_v58 = vperm.slane %v1434_v52, 0 }
  0xc8   :  { %947 = vmatpush.msra.mxu0 %v696_v59  ;;  %989 = vmatpush.msra.mxu2 %v816_v62  ;;  %v808_v9 = vld [vmem:[#allocation4 + $0x400] sm:$0xff]  ;;  %v841_v39 = vld [vmem:[#allocation4 + $0x508] sm:$0xff] }
  0xc9   :  { %967 = vmatpush.msra.mxu1 %v760_v61  ;;  %1008 = vmatpush.msra.mxu3 %v884_v63  ;;  %v876_v10 = vld [vmem:[#allocation4 + $0x620] sm:$0xff]  ;;  %v909_v40 = vld [vmem:[#allocation4 + $0x728] sm:$0xff] }
  0xca   :  { %948 = vmatpush.msra.mxu0 %v692_v2  ;;  %990 = vmatpush.msra.mxu2 %v812_v4  ;;  %v684_v12 = vld [vmem:[#allocation4 + $0x20] sm:$0xff]  ;;  %v717_v41 = vld [vmem:[#allocation4 + $0x128] sm:$0xff] }
  0xcb   :  { %968 = vmatpush.msra.mxu1 %v756_v3  ;;  %1009 = vmatpush.msra.mxu3 %v880_v5  ;;  %v748_v13 = vld [vmem:[#allocation4 + $0x220] sm:$0xff]  ;;  %v781_v42 = vld [vmem:[#allocation4 + $0x328] sm:$0xff] }
  0xcc   :  { %949 = vmatpush.msra.mxu0 %v688_v7  ;;  %991 = vmatpush.msra.mxu2 %v808_v9  ;;  %v872_v14 = vld [vmem:[#allocation4 + $0x600] sm:$0xff]  ;;  %v837_v43 = vld [vmem:[#allocation4 + $0x4e8] sm:$0xff] }
  0xcd   :  { %969 = vmatpush.msra.mxu1 %v752_v8  ;;  %1010 = vmatpush.msra.mxu3 %v876_v10  ;;  %v680_v17 = vld [vmem:[#allocation4] sm:$0xff]  ;;  %v905_v44 = vld [vmem:[#allocation4 + $0x708] sm:$0xff] }
  0xce   :  { %623 = vmatmul.f32.vlgmr.msrb.gmra.mxu2 %v1398_v60  ;;  %950 = vmatpush.msra.mxu0 %v684_v12  ;;  %v744_v18 = vld [vmem:[#allocation4 + $0x200] sm:$0xff]  ;;  %v713_v45 = vld [vmem:[#allocation4 + $0x108] sm:$0xff] }
  0xcf   :  { %1056 = vmatpush.msrb.mxu2 %v869_v11  ;;  %970 = vmatpush.msra.mxu1 %v748_v13  ;;  %v777_v46 = vld [vmem:[#allocation4 + $0x308] sm:$0xff]  ;;  %v384_v13 = vpop.f32.mrf.mxu2 }
  0xd0   :  { %1011 = vmatpush.msra.mxu3 %v872_v14  ;;  %583 = vmatmul.f32.vlgmr.msrb.gmra.mxu0 %v1403_v0  ;;  %v733_v0 = vld [vmem:[#allocation4 + $0x1a8] sm:$0xff]  ;;  %v1442_v14 = vld [vmem:[%s1501_s0] sm:$0x3f] }
  0xd1   :  { %643 = vmatmul.f32.vlgmr.msrb.gmra.mxu3 %v1408_v1  ;;  %1057 = vmatpush.msrb.mxu2 %v865_v15  ;;  %v833_v47 = vld [vmem:[#allocation4 + $0x4c8] sm:$0xff] }
  0xd2   :  { %1076 = vmatpush.msrb.mxu3 %v933_v16  ;;  %951 = vmatpush.msra.mxu0 %v680_v17  ;;  %v901_v48 = vld [vmem:[#allocation4 + $0x6e8] sm:$0xff] }
  0xd3   :  { %971 = vmatpush.msra.mxu1 %v744_v18  ;;  %1058 = vmatpush.msrb.mxu2 %v861_v21  ;;  %v709_v49 = vld [vmem:[#allocation4 + $0xe8] sm:$0xff] }
  0xd4   :  { %603 = vmatmul.f32.vlgmr.msrb.gmra.mxu1 %v1416_v6  ;;  %1016 = vmatpush.msrb.mxu0 %v741_v19  ;;  %v917_v6 = vld [vmem:[#allocation4 + $0x768] sm:$0xff] }
  0xd5   :  { %1036 = vmatpush.msrb.mxu1 %v805_v20  ;;  %1077 = vmatpush.msrb.mxu3 %v929_v22  ;;  %v773_v50 = vld [vmem:[#allocation4 + $0x2e8] sm:$0xff]  ;;  %v870_v22 = vld [vmem:[#allocation4 + $0x5f0] sm:$0xff] }
  0xd6   :  { %1017 = vmatpush.msrb.mxu0 %v737_v23  ;;  %1059 = vmatpush.msrb.mxu2 %v857_v25  ;;  %v829_v51 = vld [vmem:[#allocation4 + $0x4a8] sm:$0xff] }
  0xd7   :  { %1037 = vmatpush.msrb.mxu1 %v801_v24  ;;  %1078 = vmatpush.msrb.mxu3 %v925_v26  ;;  %v897_v53 = vld [vmem:[#allocation4 + $0x6c8] sm:$0xff] }
  0xd8   :  { %1018 = vmatpush.msrb.mxu0 %v733_v0  ;;  %1060 = vmatpush.msrb.mxu2 %v853_v28  ;;  %v705_v54 = vld [vmem:[#allocation4 + $0xc8] sm:$0xff]  ;;  %v934_v28 = vld [vmem:[#allocation4 + $0x7f0] sm:$0xff] }
  0xd9   :  { %1038 = vmatpush.msrb.mxu1 %v797_v27  ;;  %1079 = vmatpush.msrb.mxu3 %v921_v29  ;;  %v769_v55 = vld [vmem:[#allocation4 + $0x2c8] sm:$0xff]  ;;  %v866_v27 = vld [vmem:[#allocation4 + $0x5d0] sm:$0xff] }
  0xda   :  { %1019 = vmatpush.msrb.mxu0 %v729_v30  ;;  %1061 = vmatpush.msrb.mxu2 %v849_v32  ;;  %v825_v56 = vld [vmem:[#allocation4 + $0x488] sm:$0xff]  ;;  %v742_v32 = vld [vmem:[#allocation4 + $0x1f0] sm:$0xff] }
  0xdb   :  { %1039 = vmatpush.msrb.mxu1 %v793_v31  ;;  %1080 = vmatpush.msrb.mxu3 %v917_v6  ;;  %v893_v57 = vld [vmem:[#allocation4 + $0x6a8] sm:$0xff]  ;;  %v1463_v31 = vld [vmem:[%s1501_s0 + $0x18] sm:$0x3f] }
  0xdc   :  { %1020 = vmatpush.msrb.mxu0 %v725_v33  ;;  %1062 = vmatpush.msrb.mxu2 %v845_v35  ;;  %v701_v59 = vld [vmem:[#allocation4 + $0xa8] sm:$0xff]  ;;  %v806_v6 = vld [vmem:[#allocation4 + $0x3f0] sm:$0xff] }
  0xdd   :  { %1040 = vmatpush.msrb.mxu1 %v789_v34  ;;  %1081 = vmatpush.msrb.mxu3 %v913_v36  ;;  %v765_v61 = vld [vmem:[#allocation4 + $0x2a8] sm:$0xff]  ;;  %v862_v33 = vld [vmem:[#allocation4 + $0x5b0] sm:$0xff] }
  0xde   :  { %1021 = vmatpush.msrb.mxu0 %v721_v37  ;;  %1063 = vmatpush.msrb.mxu2 %v841_v39  ;;  %v821_v62 = vld [vmem:[#allocation4 + $0x468] sm:$0xff]  ;;  %v930_v34 = vld [vmem:[#allocation4 + $0x7d0] sm:$0xff] }
  0xdf   :  { %1041 = vmatpush.msrb.mxu1 %v785_v38  ;;  %1082 = vmatpush.msrb.mxu3 %v909_v40  ;;  %v889_v63 = vld [vmem:[#allocation4 + $0x688] sm:$0xff]  ;;  %v738_v35 = vld [vmem:[#allocation4 + $0x1d0] sm:$0xff] }
  0xe0   :  { %1022 = vmatpush.msrb.mxu0 %v717_v41  ;;  %1064 = vmatpush.msrb.mxu2 %v837_v43  ;;  %v697_v2 = vld [vmem:[#allocation4 + $0x88] sm:$0xff]  ;;  %v802_v36 = vld [vmem:[#allocation4 + $0x3d0] sm:$0xff] }
  0xe1   :  { %1042 = vmatpush.msrb.mxu1 %v781_v42  ;;  %1083 = vmatpush.msrb.mxu3 %v905_v44  ;;  %v761_v4 = vld [vmem:[#allocation4 + $0x288] sm:$0xff]  ;;  %v858_v37 = vld [vmem:[#allocation4 + $0x590] sm:$0xff] }
  0xe2   :  { %1023 = vmatpush.msrb.mxu0 %v713_v45  ;;  %1065 = vmatpush.msrb.mxu2 %v833_v47  ;;  %v817_v5 = vld [vmem:[#allocation4 + $0x448] sm:$0xff]  ;;  %v926_v38 = vld [vmem:[#allocation4 + $0x7b0] sm:$0xff] }
  0xe3   :  { %1043 = vmatpush.msrb.mxu1 %v777_v46  ;;  %1084 = vmatpush.msrb.mxu3 %v901_v48  ;;  %v885_v8 = vld [vmem:[#allocation4 + $0x668] sm:$0xff]  ;;  %v734_v39 = vld [vmem:[#allocation4 + $0x1b0] sm:$0xff] }
  0xe4   :  { %1024 = vmatpush.msrb.mxu0 %v709_v49  ;;  %1066 = vmatpush.msrb.mxu2 %v829_v51  ;;  %v693_v9 = vld [vmem:[#allocation4 + $0x68] sm:$0xff]  ;;  %v798_v40 = vld [vmem:[#allocation4 + $0x3b0] sm:$0xff] }
  0xe5   :  { %1044 = vmatpush.msrb.mxu1 %v773_v50  ;;  %1085 = vmatpush.msrb.mxu3 %v897_v53  ;;  %v757_v11 = vld [vmem:[#allocation4 + $0x268] sm:$0xff]  ;;  %v854_v41 = vld [vmem:[#allocation4 + $0x570] sm:$0xff] }
  0xe6   :  { %1025 = vmatpush.msrb.mxu0 %v705_v54  ;;  %1067 = vmatpush.msrb.mxu2 %v825_v56  ;;  %v813_v12 = vld [vmem:[#allocation4 + $0x428] sm:$0xff]  ;;  %v922_v42 = vld [vmem:[#allocation4 + $0x790] sm:$0xff] }
  0xe7   :  { %1045 = vmatpush.msrb.mxu1 %v769_v55  ;;  %1086 = vmatpush.msrb.mxu3 %v893_v57  ;;  %v344_v3 = vpop.f32.mrf.mxu0  ;;  %v881_v15 = vld [vmem:[#allocation4 + $0x648] sm:$0xff]  ;;  %v730_v43 = vld [vmem:[#allocation4 + $0x190] sm:$0xff] }
  0xe8   :  { %992 = vmatmul.f32.vlgmr.msra.gmra.mxu2 %v1398_v60  ;;  %1026 = vmatpush.msrb.mxu0 %v701_v59  ;;  %v345_v7 = vadd.f32 %v344_v3, %v319_v58  ;;  %v689_v16 = vld [vmem:[#allocation4 + $0x48] sm:$0xff]  ;;  %v794_v44 = vld [vmem:[#allocation4 + $0x390] sm:$0xff] }
  0xe9   :  { %1046 = vmatpush.msrb.mxu1 %v765_v61  ;;  %1068 = vmatpush.msrb.mxu2 %v821_v62  ;;  %v753_v17 = vld [vmem:[#allocation4 + $0x248] sm:$0xff]  ;;  %v850_v45 = vld [vmem:[#allocation4 + $0x550] sm:$0xff] }
  0xea   :  { %1087 = vmatpush.msrb.mxu3 %v889_v63  ;;  %1027 = vmatpush.msrb.mxu0 %v697_v2  ;;  %v809_v18 = vld [vmem:[#allocation4 + $0x408] sm:$0xff]  ;;  %v918_v46 = vld [vmem:[#allocation4 + $0x770] sm:$0xff] }
  0xeb   :  { %1012 = vmatmul.f32.vlgmr.msra.gmra.mxu3 %v1408_v1  ;;  %v364_v10 = vpop.f32.mrf.mxu1  ;;  %1047 = vmatpush.msrb.mxu1 %v761_v4  ;;  %v1448_v1 = vld [vmem:[%s1501_s0 + $0x8] sm:$0x3f]  ;;  %v877_v21 = vld [vmem:[#allocation4 + $0x628] sm:$0xff]  ;;  %v726_v47 = vld [vmem:[#allocation4 + $0x170] sm:$0xff] }
  0xec   :  { %1069 = vmatpush.msrb.mxu2 %v817_v5  ;;  %v365_v60 = vadd.f32 %v364_v10, %v345_v7  ;;  %1088 = vmatpush.msrb.mxu3 %v885_v8  ;;  %v685_v23 = vld [vmem:[#allocation4 + $0x28] sm:$0xff]  ;;  %v790_v48 = vld [vmem:[#allocation4 + $0x370] sm:$0xff] }
  0xed   :  { %952 = vmatmul.f32.vlgmr.msra.gmra.mxu0 %v1442_v14  ;;  %972 = vmatmul.f32.vlgmr.msra.gmra.mxu1 %v1448_v1  ;;  %v749_v25 = vld [vmem:[#allocation4 + $0x228] sm:$0xff]  ;;  %v846_v49 = vld [vmem:[#allocation4 + $0x530] sm:$0xff] }
  0xee   :  { %1028 = vmatpush.msrb.mxu0 %v693_v9  ;;  %v385_v19 = vadd.f32 %v384_v13, %v365_v60  ;;  %v404_v20 = vpop.f32.mrf.mxu3  ;;  %1048 = vmatpush.msrb.mxu1 %v757_v11  ;;  %v873_v26 = vld [vmem:[#allocation4 + $0x608] sm:$0xff]  ;;  %v914_v50 = vld [vmem:[#allocation4 + $0x750] sm:$0xff]  ;;  %v320_v9 = vperm.slane %v1434_v52, 1 }
  0xef   :  { %1070 = vmatpush.msrb.mxu2 %v813_v12  ;;  %1089 = vmatpush.msrb.mxu3 %v881_v15  ;;  %v1454_v0 = vld [vmem:[%s1501_s0 + $0x10] sm:$0x3f]  ;;  %v722_v51 = vld [vmem:[#allocation4 + $0x150] sm:$0xff] }
  0xf0   :  { %1029 = vmatpush.msrb.mxu0 %v689_v16  ;;  %v405_v24 = vadd.f32 %v404_v20, %v385_v19  ;;  %1049 = vmatpush.msrb.mxu1 %v753_v17  ;;  %v681_v29 = vld [vmem:[#allocation4 + $0x8] sm:$0xff]  ;;  %v786_v53 = vld [vmem:[#allocation4 + $0x350] sm:$0xff] }
  0xf1   :  { %1071 = vmatpush.msrb.mxu2 %v809_v18  ;;  %1090 = vmatpush.msrb.mxu3 %v877_v21  ;;  %v745_v30 = vld [vmem:[#allocation4 + $0x208] sm:$0xff]  ;;  %v842_v54 = vld [vmem:[#allocation4 + $0x510] sm:$0xff] }
  0xf2   :  { %1072 = vmatmul.f32.vlgmr.msrb.gmra.mxu2 %v1454_v0  ;;  %647 = vst [vmem:[%s1507_s6] sm:$0x3f] %v405_v24  ;;  %1030 = vmatpush.msrb.mxu0 %v685_v23  ;;  %v910_v55 = vld [vmem:[#allocation4 + $0x730] sm:$0xff] }
  0xf3   :  { %1136 = vmatpush.msra.mxu2 %v870_v22  ;;  %1050 = vmatpush.msrb.mxu1 %v749_v25  ;;  %v718_v56 = vld [vmem:[#allocation4 + $0x130] sm:$0xff] }
  0xf4   :  { %1091 = vmatpush.msrb.mxu3 %v873_v26  ;;  %1031 = vmatpush.msrb.mxu0 %v681_v29  ;;  %v782_v57 = vld [vmem:[#allocation4 + $0x330] sm:$0xff] }
  0xf5   :  { %1092 = vmatmul.f32.vlgmr.msrb.gmra.mxu3 %v1463_v31  ;;  %1137 = vmatpush.msra.mxu2 %v866_v27  ;;  %v838_v58 = vld [vmem:[#allocation4 + $0x4f0] sm:$0xff] }
  0xf6   :  { %1156 = vmatpush.msra.mxu3 %v934_v28  ;;  %1051 = vmatpush.msrb.mxu1 %v745_v30  ;;  %v906_v59 = vld [vmem:[#allocation4 + $0x710] sm:$0xff] }
  0xf7   :  { %1032 = vmatmul.f32.vlgmr.msrb.gmra.mxu0 %v1442_v14  ;;  %1052 = vmatmul.f32.vlgmr.msrb.gmra.mxu1 %v1448_v1  ;;  %v714_v61 = vld [vmem:[#allocation4 + $0x110] sm:$0xff] }
  0xf8   :  { %1096 = vmatpush.msra.mxu0 %v742_v32  ;;  %1116 = vmatpush.msra.mxu1 %v806_v6  ;;  %v778_v62 = vld [vmem:[#allocation4 + $0x310] sm:$0xff] }
  0xf9   :  { %1138 = vmatpush.msra.mxu2 %v862_v33  ;;  %1157 = vmatpush.msra.mxu3 %v930_v34  ;;  %v834_v63 = vld [vmem:[#allocation4 + $0x4d0] sm:$0xff] }
  0xfa   :  { %1097 = vmatpush.msra.mxu0 %v738_v35  ;;  %1117 = vmatpush.msra.mxu1 %v802_v36  ;;  %v902_v2 = vld [vmem:[#allocation4 + $0x6f0] sm:$0xff]  ;;  %v871_v36 = vld [vmem:[#allocation4 + $0x5f8] sm:$0xff] }
  0xfb   :  { %1139 = vmatpush.msra.mxu2 %v858_v37  ;;  %1158 = vmatpush.msra.mxu3 %v926_v38  ;;  %v710_v3 = vld [vmem:[#allocation4 + $0xf0] sm:$0xff] }
  0xfc   :  { %1098 = vmatpush.msra.mxu0 %v734_v39  ;;  %1118 = vmatpush.msra.mxu1 %v798_v40  ;;  %v774_v4 = vld [vmem:[#allocation4 + $0x2f0] sm:$0xff] }
  0xfd   :  { %1140 = vmatpush.msra.mxu2 %v854_v41  ;;  %1159 = vmatpush.msra.mxu3 %v922_v42  ;;  %v830_v5 = vld [vmem:[#allocation4 + $0x4b0] sm:$0xff]  ;;  %v867_v41 = vld [vmem:[#allocation4 + $0x5d8] sm:$0xff] }
  0xfe   :  { %1099 = vmatpush.msra.mxu0 %v730_v43  ;;  %1119 = vmatpush.msra.mxu1 %v794_v44  ;;  %v898_v7 = vld [vmem:[#allocation4 + $0x6d0] sm:$0xff]  ;;  %v935_v42 = vld [vmem:[#allocation4 + $0x7f8] sm:$0xff] }
  0xff   :  { %1141 = vmatpush.msra.mxu2 %v850_v45  ;;  %1160 = vmatpush.msra.mxu3 %v918_v46  ;;  %v706_v8 = vld [vmem:[#allocation4 + $0xd0] sm:$0xff]  ;;  %v743_v45 = vld [vmem:[#allocation4 + $0x1f8] sm:$0xff] }
 0x100   :  { %1100 = vmatpush.msra.mxu0 %v726_v47  ;;  %1120 = vmatpush.msra.mxu1 %v790_v48  ;;  %v770_v10 = vld [vmem:[#allocation4 + $0x2d0] sm:$0xff]  ;;  %v807_v46 = vld [vmem:[#allocation4 + $0x3f8] sm:$0xff] }
 0x101   :  { %1142 = vmatpush.msra.mxu2 %v846_v49  ;;  %1161 = vmatpush.msra.mxu3 %v914_v50  ;;  %v826_v11 = vld [vmem:[#allocation4 + $0x490] sm:$0xff]  ;;  %v863_v47 = vld [vmem:[#allocation4 + $0x5b8] sm:$0xff] }
 0x102   :  { %1101 = vmatpush.msra.mxu0 %v722_v51  ;;  %1121 = vmatpush.msra.mxu1 %v786_v53  ;;  %v894_v12 = vld [vmem:[#allocation4 + $0x6b0] sm:$0xff]  ;;  %v931_v48 = vld [vmem:[#allocation4 + $0x7d8] sm:$0xff] }
 0x103   :  { %1143 = vmatpush.msra.mxu2 %v842_v54  ;;  %1162 = vmatpush.msra.mxu3 %v910_v55  ;;  %v702_v60 = vld [vmem:[#allocation4 + $0xb0] sm:$0xff]  ;;  %v739_v49 = vld [vmem:[#allocation4 + $0x1d8] sm:$0xff] }
 0x104   :  { %1102 = vmatpush.msra.mxu0 %v718_v56  ;;  %1122 = vmatpush.msra.mxu1 %v782_v57  ;;  %v766_v13 = vld [vmem:[#allocation4 + $0x2b0] sm:$0xff]  ;;  %v803_v50 = vld [vmem:[#allocation4 + $0x3d8] sm:$0xff] }
 0x105   :  { %1144 = vmatpush.msra.mxu2 %v838_v58  ;;  %1163 = vmatpush.msra.mxu3 %v906_v59  ;;  %v822_v15 = vld [vmem:[#allocation4 + $0x470] sm:$0xff]  ;;  %v859_v51 = vld [vmem:[#allocation4 + $0x598] sm:$0xff] }
 0x106   :  { %1103 = vmatpush.msra.mxu0 %v714_v61  ;;  %1123 = vmatpush.msra.mxu1 %v778_v62  ;;  %v890_v17 = vld [vmem:[#allocation4 + $0x690] sm:$0xff]  ;;  %v927_v53 = vld [vmem:[#allocation4 + $0x7b8] sm:$0xff] }
 0x107   :  { %1145 = vmatpush.msra.mxu2 %v834_v63  ;;  %1164 = vmatpush.msra.mxu3 %v902_v2  ;;  %v698_v18 = vld [vmem:[#allocation4 + $0x90] sm:$0xff]  ;;  %v735_v54 = vld [vmem:[#allocation4 + $0x1b8] sm:$0xff] }
 0x108   :  { %1104 = vmatpush.msra.mxu0 %v710_v3  ;;  %1124 = vmatpush.msra.mxu1 %v774_v4  ;;  %v762_v20 = vld [vmem:[#allocation4 + $0x290] sm:$0xff]  ;;  %v799_v55 = vld [vmem:[#allocation4 + $0x3b8] sm:$0xff] }
 0x109   :  { %1146 = vmatpush.msra.mxu2 %v830_v5  ;;  %1165 = vmatpush.msra.mxu3 %v898_v7  ;;  %v424_v16 = vpop.f32.mrf.mxu0  ;;  %v818_v21 = vld [vmem:[#allocation4 + $0x450] sm:$0xff]  ;;  %v855_v56 = vld [vmem:[#allocation4 + $0x578] sm:$0xff] }
 0x10a   :  { %1105 = vmatpush.msra.mxu0 %v706_v8  ;;  %1125 = vmatpush.msra.mxu1 %v770_v10  ;;  %v425_v19 = vadd.f32 %v424_v16, %v320_v9  ;;  %v886_v22 = vld [vmem:[#allocation4 + $0x670] sm:$0xff]  ;;  %v923_v57 = vld [vmem:[#allocation4 + $0x798] sm:$0xff] }
 0x10b   :  { %1147 = vmatpush.msra.mxu2 %v826_v11  ;;  %1166 = vmatpush.msra.mxu3 %v894_v12  ;;  %v694_v23 = vld [vmem:[#allocation4 + $0x70] sm:$0xff]  ;;  %v731_v58 = vld [vmem:[#allocation4 + $0x198] sm:$0xff] }
 0x10c   :  { %1106 = vmatpush.msra.mxu0 %v702_v60  ;;  %1126 = vmatpush.msra.mxu1 %v766_v13  ;;  %v758_v26 = vld [vmem:[#allocation4 + $0x270] sm:$0xff]  ;;  %v795_v59 = vld [vmem:[#allocation4 + $0x398] sm:$0xff] }
 0x10d   :  { %1148 = vmatpush.msra.mxu2 %v822_v15  ;;  %v444_v24 = vpop.f32.mrf.mxu1  ;;  %v464_v25 = vpop.f32.mrf.mxu2  ;;  %1167 = vmatpush.msra.mxu3 %v890_v17  ;;  %v814_v27 = vld [vmem:[#allocation4 + $0x430] sm:$0xff]  ;;  %v851_v61 = vld [vmem:[#allocation4 + $0x558] sm:$0xff] }
 0x10e   :  { %1107 = vmatpush.msra.mxu0 %v698_v18  ;;  %v445_v28 = vadd.f32 %v444_v24, %v425_v19  ;;  %1127 = vmatpush.msra.mxu1 %v762_v20  ;;  %v882_v29 = vld [vmem:[#allocation4 + $0x650] sm:$0xff]  ;;  %v919_v62 = vld [vmem:[#allocation4 + $0x778] sm:$0xff] }
 0x10f   :  { %1149 = vmatpush.msra.mxu2 %v818_v21  ;;  %v690_v30 = vld [vmem:[#allocation4 + $0x50] sm:$0xff]  ;;  %1168 = vmatpush.msra.mxu3 %v886_v22  ;;  %v727_v63 = vld [vmem:[#allocation4 + $0x178] sm:$0xff] }
 0x110   :  { %1108 = vmatpush.msra.mxu0 %v694_v23  ;;  %v754_v32 = vld [vmem:[#allocation4 + $0x250] sm:$0xff]  ;;  %v465_v33 = vadd.f32 %v464_v25, %v445_v28  ;;  %v484_v34 = vpop.f32.mrf.mxu3  ;;  %1128 = vmatpush.msra.mxu1 %v758_v26  ;;  %v791_v2 = vld [vmem:[#allocation4 + $0x378] sm:$0xff]  ;;  %v321_v26 = vperm.slane %v1434_v52, 2 }
 0x111   :  { %v810_v6 = vld [vmem:[#allocation4 + $0x410] sm:$0xff]  ;;  %1150 = vmatpush.msra.mxu2 %v814_v27  ;;  %1169 = vmatpush.msra.mxu3 %v882_v29  ;;  %v847_v3 = vld [vmem:[#allocation4 + $0x538] sm:$0xff] }
 0x112   :  { %v878_v35 = vld [vmem:[#allocation4 + $0x630] sm:$0xff]  ;;  %1109 = vmatpush.msra.mxu0 %v690_v30  ;;  %v485_v39 = vadd.f32 %v484_v34, %v465_v33  ;;  %1129 = vmatpush.msra.mxu1 %v754_v32  ;;  %v915_v4 = vld [vmem:[#allocation4 + $0x758] sm:$0xff] }
 0x113   :  { %v686_v37 = vld [vmem:[#allocation4 + $0x30] sm:$0xff]  ;;  %1151 = vmatpush.msra.mxu2 %v810_v6  ;;  %1170 = vmatpush.msra.mxu3 %v878_v35  ;;  %v723_v5 = vld [vmem:[#allocation4 + $0x158] sm:$0xff] }
 0x114   :  { %v750_v38 = vld [vmem:[#allocation4 + $0x230] sm:$0xff]  ;;  %648 = vst [vmem:[%s1507_s6 + $0x8] sm:$0x3f] %v485_v39  ;;  %1110 = vmatpush.msra.mxu0 %v686_v37  ;;  %v787_v7 = vld [vmem:[#allocation4 + $0x358] sm:$0xff]  ;;  %1152 = vmatmul.f32.vlgmr.msra.gmra.mxu2 %v1454_v0 }
 0x115   :  { %v874_v40 = vld [vmem:[#allocation4 + $0x610] sm:$0xff]  ;;  %1216 = vmatpush.msrb.mxu2 %v871_v36  ;;  %1130 = vmatpush.msra.mxu1 %v750_v38  ;;  %v843_v8 = vld [vmem:[#allocation4 + $0x518] sm:$0xff] }
 0x116   :  { %v682_v43 = vld [vmem:[#allocation4 + $0x10] sm:$0xff]  ;;  %1171 = vmatpush.msra.mxu3 %v874_v40  ;;  %v911_v9 = vld [vmem:[#allocation4 + $0x738] sm:$0xff] }
 0x117   :  { %v746_v44 = vld [vmem:[#allocation4 + $0x210] sm:$0xff]  ;;  %1217 = vmatpush.msrb.mxu2 %v867_v41  ;;  %1111 = vmatpush.msra.mxu0 %v682_v43  ;;  %v719_v10 = vld [vmem:[#allocation4 + $0x138] sm:$0xff] }
 0x118   :  { %1236 = vmatpush.msrb.mxu3 %v935_v42  ;;  %1131 = vmatpush.msra.mxu1 %v746_v44  ;;  %v783_v11 = vld [vmem:[#allocation4 + $0x338] sm:$0xff] }
 0x119   :  { %1176 = vmatpush.msrb.mxu0 %v743_v45  ;;  %1218 = vmatpush.msrb.mxu2 %v863_v47  ;;  %v839_v12 = vld [vmem:[#allocation4 + $0x4f8] sm:$0xff] }
 0x11a   :  { %1196 = vmatpush.msrb.mxu1 %v807_v46  ;;  %1237 = vmatpush.msrb.mxu3 %v931_v48  ;;  %v907_v60 = vld [vmem:[#allocation4 + $0x718] sm:$0xff] }
 0x11b   :  { %1177 = vmatpush.msrb.mxu0 %v739_v49  ;;  %1219 = vmatpush.msrb.mxu2 %v859_v51  ;;  %v715_v13 = vld [vmem:[#allocation4 + $0x118] sm:$0xff] }
 0x11c   :  { %1197 = vmatpush.msrb.mxu1 %v803_v50  ;;  %1238 = vmatpush.msrb.mxu3 %v927_v53  ;;  %v779_v15 = vld [vmem:[#allocation4 + $0x318] sm:$0xff] }
 0x11d   :  { %1178 = vmatpush.msrb.mxu0 %v735_v54  ;;  %1220 = vmatpush.msrb.mxu2 %v855_v56  ;;  %v835_v16 = vld [vmem:[#allocation4 + $0x4d8] sm:$0xff] }
 0x11e   :  { %1198 = vmatpush.msrb.mxu1 %v799_v55  ;;  %1239 = vmatpush.msrb.mxu3 %v923_v57  ;;  %v903_v17 = vld [vmem:[#allocation4 + $0x6f8] sm:$0xff]  ;;  %v322_v57 = vperm.slane %v1434_v52, 3 }
 0x11f   :  { %1179 = vmatpush.msrb.mxu0 %v731_v58  ;;  %1221 = vmatpush.msrb.mxu2 %v851_v61  ;;  %v711_v18 = vld [vmem:[#allocation4 + $0xf8] sm:$0xff] }
 0x120   :  { %1199 = vmatpush.msrb.mxu1 %v795_v59  ;;  %1240 = vmatpush.msrb.mxu3 %v919_v62  ;;  %v775_v19 = vld [vmem:[#allocation4 + $0x2f8] sm:$0xff] }
 0x121   :  { %1180 = vmatpush.msrb.mxu0 %v727_v63  ;;  %1222 = vmatpush.msrb.mxu2 %v847_v3  ;;  %v831_v20 = vld [vmem:[#allocation4 + $0x4b8] sm:$0xff] }
 0x122   :  { %1200 = vmatpush.msrb.mxu1 %v791_v2  ;;  %1241 = vmatpush.msrb.mxu3 %v915_v4  ;;  %v899_v21 = vld [vmem:[#allocation4 + $0x6d8] sm:$0xff] }
 0x123   :  { %1181 = vmatpush.msrb.mxu0 %v723_v5  ;;  %1223 = vmatpush.msrb.mxu2 %v843_v8  ;;  %v707_v22 = vld [vmem:[#allocation4 + $0xd8] sm:$0xff] }
 0x124   :  { %1201 = vmatpush.msrb.mxu1 %v787_v7  ;;  %1242 = vmatpush.msrb.mxu3 %v911_v9  ;;  %v771_v23 = vld [vmem:[#allocation4 + $0x2d8] sm:$0xff] }
 0x125   :  { %1182 = vmatpush.msrb.mxu0 %v719_v10  ;;  %1224 = vmatpush.msrb.mxu2 %v839_v12  ;;  %v827_v24 = vld [vmem:[#allocation4 + $0x498] sm:$0xff] }
 0x126   :  { %1202 = vmatpush.msrb.mxu1 %v783_v11  ;;  %1243 = vmatpush.msrb.mxu3 %v907_v60  ;;  %v895_v25 = vld [vmem:[#allocation4 + $0x6b8] sm:$0xff] }
 0x127   :  { %1183 = vmatpush.msrb.mxu0 %v715_v13  ;;  %1225 = vmatpush.msrb.mxu2 %v835_v16  ;;  %v703_v27 = vld [vmem:[#allocation4 + $0xb8] sm:$0xff] }
 0x128   :  { %1203 = vmatpush.msrb.mxu1 %v779_v15  ;;  %1244 = vmatpush.msrb.mxu3 %v903_v17  ;;  %v767_v28 = vld [vmem:[#allocation4 + $0x2b8] sm:$0xff] }
 0x129   :  { %1184 = vmatpush.msrb.mxu0 %v711_v18  ;;  %1226 = vmatpush.msrb.mxu2 %v831_v20  ;;  %v823_v29 = vld [vmem:[#allocation4 + $0x478] sm:$0xff] }
 0x12a   :  { %1204 = vmatpush.msrb.mxu1 %v775_v19  ;;  %1245 = vmatpush.msrb.mxu3 %v899_v21  ;;  %v891_v30 = vld [vmem:[#allocation4 + $0x698] sm:$0xff] }
 0x12b   :  { %1185 = vmatpush.msrb.mxu0 %v707_v22  ;;  %1227 = vmatpush.msrb.mxu2 %v827_v24  ;;  %v699_v32 = vld [vmem:[#allocation4 + $0x98] sm:$0xff]  ;;  %v504_v6 = vpop.f32.mrf.mxu0 }
 0x12c   :  { %1205 = vmatpush.msrb.mxu1 %v771_v23  ;;  %1246 = vmatpush.msrb.mxu3 %v895_v25  ;;  %v763_v33 = vld [vmem:[#allocation4 + $0x298] sm:$0xff]  ;;  %v505_v35 = vadd.f32 %v504_v6, %v321_v26 }
 0x12d   :  { %1186 = vmatpush.msrb.mxu0 %v703_v27  ;;  %v819_v34 = vld [vmem:[#allocation4 + $0x458] sm:$0xff]  ;;  %1228 = vmatpush.msrb.mxu2 %v823_v29 }
 0x12e   :  { %1206 = vmatpush.msrb.mxu1 %v767_v28  ;;  %1247 = vmatpush.msrb.mxu3 %v891_v30  ;;  %v887_v36 = vld [vmem:[#allocation4 + $0x678] sm:$0xff] }
 0x12f   :  { %1172 = vmatmul.f32.vlgmr.msra.gmra.mxu3 %v1463_v31  ;;  %1187 = vmatpush.msrb.mxu0 %v699_v32  ;;  %v695_v37 = vld [vmem:[#allocation4 + $0x78] sm:$0xff]  ;;  %v524_v38 = vpop.f32.mrf.mxu1  ;;  %v544_v39 = vpop.f32.mrf.mxu2 }
 0x130   :  { %1207 = vmatpush.msrb.mxu1 %v763_v33  ;;  %1229 = vmatpush.msrb.mxu2 %v819_v34  ;;  %v759_v40 = vld [vmem:[#allocation4 + $0x278] sm:$0xff]  ;;  %v525_v42 = vadd.f32 %v524_v38, %v505_v35 }
 0x131   :  { %v815_v41 = vld [vmem:[#allocation4 + $0x438] sm:$0xff]  ;;  %1248 = vmatpush.msrb.mxu3 %v887_v36  ;;  %1112 = vmatmul.f32.vlgmr.msra.gmra.mxu0 %v1442_v14 }
 0x132   :  { %v883_v43 = vld [vmem:[#allocation4 + $0x658] sm:$0xff]  ;;  %1132 = vmatmul.f32.vlgmr.msra.gmra.mxu1 %v1448_v1  ;;  %1188 = vmatpush.msrb.mxu0 %v695_v37  ;;  %v545_v47 = vadd.f32 %v544_v39, %v525_v42  ;;  %v564_v48 = vpop.f32.mrf.mxu3 }
 0x133   :  { %v691_v44 = vld [vmem:[#allocation4 + $0x58] sm:$0xff]  ;;  %1208 = vmatpush.msrb.mxu1 %v759_v40  ;;  %1230 = vmatpush.msrb.mxu2 %v815_v41 }
 0x134   :  { %v755_v45 = vld [vmem:[#allocation4 + $0x258] sm:$0xff]  ;;  %1249 = vmatpush.msrb.mxu3 %v883_v43  ;;  %1189 = vmatpush.msrb.mxu0 %v691_v44  ;;  %v565_v53 = vadd.f32 %v564_v48, %v545_v47 }
 0x135   :  { %v811_v46 = vld [vmem:[#allocation4 + $0x418] sm:$0xff]  ;;  %1209 = vmatpush.msrb.mxu1 %v755_v45 }
 0x136   :  { %v879_v49 = vld [vmem:[#allocation4 + $0x638] sm:$0xff]  ;;  %1231 = vmatpush.msrb.mxu2 %v811_v46  ;;  %649 = vst [vmem:[%s1507_s6 + $0x10] sm:$0x3f] %v565_v53 }
 0x137   :  { %v687_v50 = vld [vmem:[#allocation4 + $0x38] sm:$0xff]  ;;  %1250 = vmatpush.msrb.mxu3 %v879_v49  ;;  %1232 = vmatmul.f32.vlgmr.msrb.gmra.mxu2 %v1454_v0 }
 0x138   :  { %v751_v51 = vld [vmem:[#allocation4 + $0x238] sm:$0xff]  ;;  %1190 = vmatpush.msrb.mxu0 %v687_v50 }
 0x139   :  { %v875_v54 = vld [vmem:[#allocation4 + $0x618] sm:$0xff]  ;;  %1210 = vmatpush.msrb.mxu1 %v751_v51 }
 0x13a   :  { %v683_v55 = vld [vmem:[#allocation4 + $0x18] sm:$0xff]  ;;  %1251 = vmatpush.msrb.mxu3 %v875_v54 }
 0x13b   :  { %v747_v56 = vld [vmem:[#allocation4 + $0x218] sm:$0xff]  ;;  %1252 = vmatmul.f32.vlgmr.msrb.gmra.mxu3 %v1463_v31  ;;  %1191 = vmatpush.msrb.mxu0 %v683_v55 }
 0x13c   :  { %1211 = vmatpush.msrb.mxu1 %v747_v56  ;;  %1192 = vmatmul.f32.vlgmr.msrb.gmra.mxu0 %v1442_v14  ;;  %v651_v59 = vld [vmem:[%s1502_s1] sm:$0xff] }
 0x13d   :  { %1212 = vmatmul.f32.vlgmr.msrb.gmra.mxu1 %v1448_v1  ;;  %653 = vst [vmem:[#allocation1] ss:$4 sm:$0xff] %v651_v59  ;;  %v666_v18 = vld [vmem:[%s1506_s5] sm:$0xf] }
 0x13e   :  { %v669_v25 = vperm.slane %v666_v18, 1  ;;  %v670_v32 = vperm.slane %v666_v18, 2  ;;  %v671_v36 = vperm.slane %v666_v18, 3  ;;  %v668_v38 = vperm.slane %v666_v18, 0 }
 0x144   :  { %v655_v19 = vld.sshfl [vmem:[#allocation1 + $0x8] sm:$0xff pattern:$0x73625140]  ;;  %v656_v21 = vld.sshfl [vmem:[#allocation1 + $0x10] sm:$0xff pattern:$0x73625140] }
 0x145   :  { %v663_v24 = vadd.f32 %v1448_v1, %v655_v19  ;;  %v657_v26 = vld.sshfl [vmem:[#allocation1 + $0x18] sm:$0xff pattern:$0x73625140]  ;;  %v654_v28 = vld.sshfl [vmem:[#allocation1] sm:$0xff pattern:$0x73625140]  ;;  %v664_v30 = vadd.f32 %v1454_v0, %v656_v21 }
 0x146   :  { %v665_v35 = vadd.f32 %v1463_v31, %v657_v26  ;;  %v662_v37 = vadd.f32 %v1442_v14, %v654_v28 }
 0x147   :  { %v677_v6 = vadd.f32 %v669_v25, %v663_v24  ;;  %v678_v1 = vadd.f32 %v670_v32, %v664_v30 }
 0x148   :  { %v679_v46 = vadd.f32 %v671_v36, %v665_v35  ;;  %v676_v47 = vadd.f32 %v668_v38, %v662_v37 }
 0x14d   :  { %v584_v58 = vpop.f32.mrf.mxu0 }
 0x14e   :  { %v585_v61 = vadd.f32 %v584_v58, %v322_v57 }
 0x151   :  { %v604_v62 = vpop.f32.mrf.mxu1  ;;  %v624_v63 = vpop.f32.mrf.mxu2 }
 0x152   :  { %v605_v2 = vadd.f32 %v604_v62, %v585_v61 }
 0x154   :  { %v625_v3 = vadd.f32 %v624_v63, %v605_v2  ;;  %v644_v4 = vpop.f32.mrf.mxu3 }
 0x156   :  { %v645_v5 = vadd.f32 %v644_v4, %v625_v3 }
 0x158   :  { %650 = vst [vmem:[%s1507_s6 + $0x18] sm:$0x3f] %v645_v5 }
 0x16a   :  { %v953_v7 = vpop.f32.mrf.mxu0  ;;  %v973_v8 = vpop.f32.mrf.mxu1 }
 0x16b   :  { %v993_v52 = vpop.f32.mrf.mxu2  ;;  %v974_v27 = vadd.f32 %v973_v8, %v953_v7 }
 0x16d   :  { %v994_v40 = vadd.f32 %v993_v52, %v974_v27 }
 0x16e   :  { %v1013_v9 = vpop.f32.mrf.mxu3 }
 0x16f   :  { %v1014_v48 = vadd.f32 %v1013_v9, %v994_v40 }
 0x171   :  { %v1256_v14 = vadd.f32 %v1014_v48, %v676_v47 }
 0x174   :  { %v1033_v10 = vpop.f32.mrf.mxu0  ;;  %v1053_v11 = vpop.f32.mrf.mxu1 }
 0x175   :  { %v1073_v12 = vpop.f32.mrf.mxu2  ;;  %v1054_v15 = vadd.f32 %v1053_v11, %v1033_v10 }
 0x177   :  { %v1074_v23 = vadd.f32 %v1073_v12, %v1054_v15 }
 0x178   :  { %v1093_v60 = vpop.f32.mrf.mxu3 }
 0x179   :  { %v1094_v33 = vadd.f32 %v1093_v60, %v1074_v23 }
 0x17b   :  { %v1257_v44 = vadd.f32 %v1094_v33, %v677_v6 }
 0x17d   :  { %v1264_v51 = vrot.slane %v1257_v44, 6 }
 0x17f   :  { %v1268_v55 = vsel %vm1267_vm0, %v1256_v14, %v1264_v51 }
 0x197   :  { %v1153_v17 = vpop.f32.mrf.mxu2 }
 0x1ae   :  { %v1113_v13 = vpop.f32.mrf.mxu0 }
 0x1af   :  { %v1133_v16 = vpop.f32.mrf.mxu1 }
 0x1b0   :  { %v1134_v20 = vadd.f32 %v1133_v16, %v1113_v13 }
 0x1b2   :  { %v1173_v22 = vpop.f32.mrf.mxu3  ;;  %v1154_v29 = vadd.f32 %v1153_v17, %v1134_v20 }
 0x1b4   :  { %v1174_v41 = vadd.f32 %v1173_v22, %v1154_v29 }
 0x1b6   :  { %v1258_v49 = vadd.f32 %v1174_v41, %v678_v1 }
 0x1b8   :  { %v1265_v53 = vrot.slane %v1258_v49, 4 }
 0x1b9   :  { %v1193_v34 = vpop.f32.mrf.mxu0 }
 0x1ba   :  { %v1213_v39 = vpop.f32.mrf.mxu1  ;;  %v1233_v43 = vpop.f32.mrf.mxu2 }
 0x1bb   :  { %v1214_v42 = vadd.f32 %v1213_v39, %v1193_v34 }
 0x1bd   :  { %v1234_v45 = vadd.f32 %v1233_v43, %v1214_v42 }
 0x1be   :  { %v1253_v0 = vpop.f32.mrf.mxu3 }
 0x1bf   :  { %v1254_v50 = vadd.f32 %v1253_v0, %v1234_v45 }
 0x1c1   :  { %v1259_v31 = vadd.f32 %v1254_v50, %v679_v46 }
 0x1c3   :  { %v1266_v54 = vrot.slane %v1259_v31, 2 }
 0x1c5   :  { %v1270_v56 = vsel %vm1269_vm1, %v1265_v53, %v1266_v54 }
 0x1c6   :  { %v1272_v57 = vsel %vm1271_vm2, %v1268_v55, %v1270_v56 }
 0x1c7   :  { %1274 = vst [vmem:[%s1508_s7] sm:$0xff] %v1272_v57 }
 0x1c8   :  { %1283 = vsyncpa [#allocation3], 1 }
 0x1c9   :  { %1284 = vsyncpa [#allocation5], 1 }

</bundles_post_ra>
